<compile_context>
chip_gen: v5e
topology: v5e:2x2
jax: 0.10.0
libtpu: 0.0.40
codegen_flags: <defaults>
</compile_context>

<pallas_src>
import jax
import jax.numpy as jnp
from jax import lax
from jax.experimental import pallas as pl
from jax.experimental.pallas import tpu as pltpu


GEM_EPS = 1e-6
BN_EPS = 1e-5
NORM_EPS = 1e-12

_VMEM_CAP = 48 * 1024 * 1024          # safe on v7x (64 MiB part); v5e/v6e can go higher
_X_TILE_BUDGET = 40 * 1024 * 1024     # budget for the double-buffered f32 feature tile


def _round_up(x, m):
    return (x + m - 1) // m * m


# ---------------------------------------------------------------------------
# Kernel 1: GeM pooling + (BN-folded) neck Linear + PReLU + L2-normalize.
# grid = (batch tiles,)   [parallel]
# ---------------------------------------------------------------------------
def _make_gem_neck_kernel(static_p):
    def kernel(p_ref, a_ref, x_ref, w1_ref, b1_ref, emb_ref, pooled_ref):
        tb, c, hw = x_ref.shape
        inv_hw = 1.0 / float(hw)

        if static_p is None:
            p = p_ref[0]                       # trainable exponent (SMEM scalar)
            inv_p = 1.0 / p
        else:
            p = float(static_p)
            inv_p = 1.0 / p

        def pow_p(v):
            # clamp(x, eps)^p over one (bc, C, HW) chunk.
            if static_p is not None and float(static_p) == int(static_p) \
                    and 1 <= int(static_p) <= 8:
                r = v
                for _ in range(int(static_p) - 1):
                    r = r * v                  # VPU-only integer power, no EUP
                return r
            return jnp.exp(p * jnp.log(v))     # traced / non-integer p -> EUP (f32)

        # GeM: chunk over the batch (leading) axis so live f32 temporaries stay
        # at (8, C, HW) instead of (tb, C, HW); reduce over the lane (HW) axis.
        bc = 8
        n_chunks = tb // bc

        def chunk(ci, carry):
            off = pl.multiple_of(ci * bc, bc)
            xs = x_ref[pl.ds(off, bc), :, :]                      # (bc, C, HW) f32
            xp = pow_p(jnp.maximum(xs, GEM_EPS))
            pooled_ref[pl.ds(off, bc), :] = jnp.sum(xp, axis=-1) * inv_hw
            return carry

        lax.fori_loop(0, n_chunks, chunk, 0, unroll=(n_chunks <= 8))

        pooled = pooled_ref[...]                                  # (tb, C) f32, > 0
        pooled = jnp.exp(inv_p * jnp.log(pooled))                 # ^(1/p): small tile

        # neck: Linear(C->E) with eval-mode BatchNorm1d folded in (wrapper);
        # bf16 x bf16 MXU matmul, f32 accumulation.
        h = jnp.dot(pooled.astype(jnp.bfloat16), w1_ref[...],
                    preferred_element_type=jnp.float32) + b1_ref[...]

        # neck: PReLU (single weight, SMEM scalar).
        a = a_ref[0]
        h = jnp.where(h >= 0.0, h, a * h)

        # head pre-step: L2-normalize features (rsqrt + mul, no divide).
        sumsq = jnp.sum(h * h, axis=-1, keepdims=True)
        inv_norm = lax.rsqrt(jnp.maximum(sumsq, NORM_EPS * NORM_EPS))
        emb_ref[...] = (h * inv_norm).astype(emb_ref.dtype)

    return kernel


# ---------------------------------------------------------------------------
# Kernel 2: cosine head.  grid = (class tiles OUTER, batch tiles INNER).
# The pre-normalized, pre-blocked head weight streams from HBM exactly once.
# ---------------------------------------------------------------------------
def _head_kernel(emb_ref, w2_ref, o_ref):
    o_ref[...] = jnp.dot(emb_ref[...].astype(jnp.bfloat16), w2_ref[0],
                         preferred_element_type=jnp.float32)


# ---------------------------------------------------------------------------
# Wrapper-side weight preparation (run ONCE, O(weights)).
# ---------------------------------------------------------------------------
def prepare_weights(params, *, tn=2048):
    """Fold BN into the neck Linear; L2-normalize, block and cast the head weight."""
    E, C = params["w_neck"].shape
    N = params["w_head"].shape[0]

    scale = params["bn_gamma"] * lax.rsqrt(params["bn_var"] + BN_EPS)        # (1, E)
    w1 = (params["w_neck"].T * scale).astype(jnp.bfloat16)                   # (C, E)
    b1 = ((params["b_neck"] - params["bn_mean"]) * scale
          + params["bn_beta"]).astype(jnp.float32)                           # (1, E)

    w2 = params["w_head"].astype(jnp.float32)                                # (N, E)
    w2 = w2 * lax.rsqrt(jnp.maximum(jnp.sum(w2 * w2, axis=-1, keepdims=True),
                                    NORM_EPS * NORM_EPS))

    tn_eff = max(128, (tn // 128) * 128)
    tn_eff = min(tn_eff, _round_up(N, 128))
    n_pad = _round_up(N, tn_eff)
    if n_pad != N:
        w2 = jnp.pad(w2, ((0, n_pad - N), (0, 0)))     # zero rows -> zero logits
    nb_n = n_pad // tn_eff
    # (nb_n, E, tn): each class tile is one contiguous (E*tn*2)-byte DMA.
    w2_blocks = jnp.transpose(w2.reshape(nb_n, tn_eff, E), (0, 2, 1)).astype(jnp.bfloat16)

    return {
        "gem_p": params["gem_p"].astype(jnp.float32),
        "prelu_a": params["prelu_a"].astype(jnp.float32),
        "w1": w1, "b1": b1, "w2_blocks": w2_blocks,
    }


# ---------------------------------------------------------------------------
# Forward pass.
# ---------------------------------------------------------------------------
def net_forward(x_nchw, prepped, *, n_classes, static_gem_p=None, tb=256):
    """x_nchw: (B, C, H, W) backbone feature map. Returns cosine logits (B, n_classes)."""
    B, C, H, W = x_nchw.shape
    HW = H * W
    w1, b1, w2b = prepped["w1"], prepped["b1"], prepped["w2_blocks"]
    E = w1.shape[1]
    nb_n, _, tn = w2b.shape
    n_pad = nb_n * tn
    N = n_classes

    # NCHW -> (B, C, HW): a FREE reshape (no transpose, no extra HBM pass).
    x = x_nchw.reshape(B, C, HW).astype(jnp.float32)

    # Batch tiling: sublane-aligned; shrink until the f32 tile fits the budget.
    tb_eff = min(tb, _round_up(B, 8))
    while tb_eff > 8 and 2 * tb_eff * C * HW * 4 > _X_TILE_BUDGET:
        tb_eff = max(8, (tb_eff // 2) // 8 * 8)
    b_pad = _round_up(B, tb_eff)
    if b_pad != B:
        x = jnp.pad(x, ((0, b_pad - B), (0, 0), (0, 0)))
    nb_b = b_pad // tb_eff

    smem_spec = pl.BlockSpec(memory_space=pltpu.MemorySpace.SMEM)

    # ---------------- kernel 1: GeM + neck + L2-norm -> embeddings ------------
    est_a = (2 * (tb_eff * C * HW * 4 + tb_eff * E * 4 + C * E * 2 + E * 4)
             + tb_eff * C * 4)
    vmem_a = int(min(max(2 * est_a, 8 << 20), _VMEM_CAP))
    emb = pl.pallas_call(
        _make_gem_neck_kernel(static_gem_p),
        out_shape=jax.ShapeDtypeStruct((b_pad, E), jnp.float32),
        grid=(nb_b,),
        in_specs=[
            smem_spec,                                              # gem_p   (1,)
            smem_spec,                                              # prelu_a (1,)
            pl.BlockSpec((tb_eff, C, HW), lambda i: (i, 0, 0)),     # feature map (f32)
            pl.BlockSpec((C, E), lambda i: (0, 0)),                 # folded neck weight (bf16)
            pl.BlockSpec((1, E), lambda i: (0, 0)),                 # folded neck bias (f32)
        ],
        out_specs=pl.BlockSpec((tb_eff, E), lambda i: (i, 0)),
        scratch_shapes=[pltpu.VMEM((tb_eff, C), jnp.float32)],      # pooled GeM features
        compiler_params=pltpu.CompilerParams(
            dimension_semantics=("parallel",),
            vmem_limit_bytes=vmem_a,
        ),
        cost_estimate=pl.CostEstimate(
            flops=5 * b_pad * C * HW + 2 * b_pad * C * E + 6 * b_pad * E,
            transcendentals=((2 * b_pad * C * HW) if static_gem_p is None else 0)
            + 2 * b_pad * C + b_pad,
            bytes_accessed=b_pad * C * HW * 4 + C * E * 2 + E * 4 + b_pad * E * 4,
        ),
    )(prepped["gem_p"], prepped["prelu_a"], x, w1, b1)

    # ---------------- kernel 2: cosine head ------------------------------------
    # Class tiles on the OUTER grid axis: the head weight streams exactly once;
    # the tiny (B, E) embedding is the revisited block.  Both axes parallel.
    est_b = 2 * (tb_eff * E * 4 + E * tn * 2 + tb_eff * tn * 4)
    vmem_b = int(min(max(2 * est_b, 8 << 20), _VMEM_CAP))
    logits_padded = pl.pallas_call(
        _head_kernel,
        out_shape=jax.ShapeDtypeStruct((b_pad, n_pad), jnp.float32),
        grid=(nb_n, nb_b),
        in_specs=[
            pl.BlockSpec((tb_eff, E), lambda j, i: (i, 0)),         # embeddings (f32)
            pl.BlockSpec((1, E, tn), lambda j, i: (j, 0, 0)),       # blocked head weight (bf16)
        ],
        out_specs=pl.BlockSpec((tb_eff, tn), lambda j, i: (i, j)),
        compiler_params=pltpu.CompilerParams(
            dimension_semantics=("parallel", "parallel"),
            vmem_limit_bytes=vmem_b,
        ),
        cost_estimate=pl.CostEstimate(
            flops=2 * b_pad * E * n_pad,
            transcendentals=0,
            bytes_accessed=E * n_pad * 2 + nb_n * b_pad * E * 4 + b_pad * n_pad * 4,
        ),
    )(emb, w2b)

    return logits_padded[:B, :N]


# ---------------------------------------------------------------------------
# Pure-JAX reference & parameter init.
# ---------------------------------------------------------------------------
def reference_forward(x_nchw, params):
    x = x_nchw.astype(jnp.float32)
    p = params["gem_p"][0]
    xc = jnp.maximum(x, GEM_EPS)
    pooled = jnp.mean(xc ** p, axis=(2, 3)) ** (1.0 / p)                    # (B, C)
    h = pooled @ params["w_neck"].T + params["b_neck"]
    h = ((h - params["bn_mean"]) * lax.rsqrt(params["bn_var"] + BN_EPS)
         * params["bn_gamma"] + params["bn_beta"])
    a = params["prelu_a"][0]
    h = jnp.where(h >= 0.0, h, a * h)
    f = h / jnp.maximum(jnp.linalg.norm(h, axis=-1, keepdims=True), NORM_EPS)
    w = params["w_head"]
    wn = w / jnp.maximum(jnp.linalg.norm(w, axis=-1, keepdims=True), NORM_EPS)
    return f @ wn.T


def init_params(key, c_feat, embedding_size, n_classes):
    ks = jax.random.split(key, 7)

    def xavier_uniform(k, out_f, in_f):
        bound = (6.0 / (in_f + out_f)) ** 0.5
        return jax.random.uniform(k, (out_f, in_f), jnp.float32, -bound, bound)

    return {
        # GeM (p_trainable=True, init 3.0)
        "gem_p": jnp.full((1,), 3.0, jnp.float32),
        # neck option-D: Linear(C -> E, bias=True)
        "w_neck": xavier_uniform(ks[0], embedding_size, c_feat),
        "b_neck": 0.01 * jax.random.normal(ks[1], (1, embedding_size), jnp.float32),
        # BatchNorm1d eval-mode running stats (randomized to exercise the BN fold)
        "bn_gamma": 1.0 + 0.1 * jax.random.normal(ks[2], (1, embedding_size), jnp.float32),
        "bn_beta": 0.05 * jax.random.normal(ks[3], (1, embedding_size), jnp.float32),
        "bn_mean": 0.1 * jax.random.normal(ks[4], (1, embedding_size), jnp.float32),
        "bn_var": 1.0 + 0.1 * jnp.abs(jax.random.normal(ks[5], (1, embedding_size), jnp.float32)),
        # PReLU default single weight
        "prelu_a": jnp.full((1,), 0.25, jnp.float32),
        # ArcMarginProduct weight (n_classes, E), xavier_uniform
        "w_head": xavier_uniform(ks[6], n_classes, embedding_size),
    }


if __name__ == "__main__":
    # Small shapes: batch=2, backbone feature channels=64, spatial 8x8,
    # embedding_size=32, n_classes=16.
    B, C, H, W = 2, 64, 8, 8
    E, N = 32, 16

    key = jax.random.PRNGKey(0)
    k_x, k_p = jax.random.split(key)

    x = jax.random.normal(k_x, (B, C, H, W), jnp.float32)   # backbone feature map (NCHW)
    params = init_params(k_p, C, E, N)

    prepped = prepare_weights(params)                        # run once (O(weights))

    fwd = jax.jit(net_forward, static_argnames=("n_classes", "static_gem_p", "tb"))

    logits = fwd(x, prepped, n_classes=N)                       # traced GeM exponent
    logits_p3 = fwd(x, prepped, n_classes=N, static_gem_p=3.0)  # frozen p=3: VPU cube path
    jax.block_until_ready((logits, logits_p3))

    ref = reference_forward(x, params)

    assert logits.shape == (B, N)
    assert bool(jnp.all(jnp.isfinite(logits)))
    # cosine outputs: |.| <= 1 up to bf16 neck/head quantization
    assert bool(jnp.all(jnp.abs(logits) <= 1.0 + 2e-2))
    assert bool(jnp.allclose(logits, ref, atol=3e-2))
    assert bool(jnp.allclose(logits_p3, ref, atol=3e-2))

    print("KERNEL_OK")
</pallas_src>

<mosaic_0001>
module attributes {stable_mosaic.version = 11 : i64} {
  func.func @kernel(%arg0: i32, %arg1: memref<1xf32, #tpu.memory_space<smem>>, %arg2: memref<1xf32, #tpu.memory_space<smem>>, %arg3: memref<8x64x64xf32, #tpu.memory_space<vmem>>, %arg4: memref<64x32xbf16, #tpu.memory_space<vmem>>, %arg5: memref<1x32xf32, #tpu.memory_space<vmem>>, %arg6: memref<8x32xf32, #tpu.memory_space<vmem>>, %arg7: memref<8x64xf32, #tpu.memory_space<vmem>>) attributes {dimension_semantics = [#tpu.dimension_semantics<parallel>], iteration_bounds = array<i64: 1>, scalar_prefetch = 0 : i64, scratch_operands = 1 : i64, tpu.core_type = #tpu.core_type<tc>, window_params = [{transform_indices = @transform_0, window_bounds = array<i64: 1>}, {transform_indices = @transform_1, window_bounds = array<i64: 1>}, {transform_indices = @transform_2, window_bounds = array<i64: 8, 64, 64>}, {pipeline_mode = #tpu.pipeline_mode<synchronous>, transform_indices = @transform_3, window_bounds = array<i64: 64, 32>}, {pipeline_mode = #tpu.pipeline_mode<synchronous>, transform_indices = @transform_4, window_bounds = array<i64: 1, 32>}, {transform_indices = @transform_5, window_bounds = array<i64: 8, 32>}]} {
    %c0 = arith.constant 0 : index
    %0 = memref.load %arg1[%c0] : memref<1xf32, #tpu.memory_space<smem>>
    %cst = arith.constant 1.000000e+00 : f32
    %1 = arith.divf %cst, %0 : f32
    %c0_i32 = arith.constant 0 : i32
    %c8_i32 = arith.constant 8 : i32
    %2 = arith.muli %c0_i32, %c8_i32 : i32
    %3 = tpu.assume_multiple %2, 8 : i32
    %4 = arith.index_cast %3 : i32 to index
    %c0_0 = arith.constant 0 : index
    %c0_1 = arith.constant 0 : index
    %5 = vector.load %arg3[%4, %c0_0, %c0_1] : memref<8x64x64xf32, #tpu.memory_space<vmem>>, vector<8x64x64xf32>
    %cst_2 = arith.constant 9.99999997E-7 : f32
    %6 = vector.broadcast %cst_2 : f32 to vector<8x64x64xf32>
    %7 = arith.maximumf %5, %6 : vector<8x64x64xf32>
    %8 = math.log %7 : vector<8x64x64xf32>
    %9 = vector.broadcast %0 : f32 to vector<8x64x64xf32>
    %10 = arith.mulf %9, %8 : vector<8x64x64xf32>
    %11 = math.exp %10 : vector<8x64x64xf32>
    %cst_3 = arith.constant dense<0.000000e+00> : vector<8x64xf32>
    %12 = vector.multi_reduction <add>, %11, %cst_3 [2] : vector<8x64x64xf32> to vector<8x64xf32>
    %cst_4 = arith.constant 1.562500e-02 : f32
    %13 = vector.broadcast %cst_4 : f32 to vector<8x64xf32>
    %14 = arith.mulf %12, %13 : vector<8x64xf32>
    %15 = arith.index_cast %3 : i32 to index
    %c0_5 = arith.constant 0 : index
    %16 = vector.load %arg7[%15, %c0_5] : memref<8x64xf32, #tpu.memory_space<vmem>>, vector<8x64xf32>
    tpu.vector_store %arg7[%15, %c0_5], %14 {strides = array<i32>} : memref<8x64xf32, #tpu.memory_space<vmem>>, vector<8x64xf32>,
    %c1_i32 = arith.constant 1 : i32
    %c0_6 = arith.constant 0 : index
    %c0_7 = arith.constant 0 : index
    %17 = vector.load %arg7[%c0_6, %c0_7] : memref<8x64xf32, #tpu.memory_space<vmem>>, vector<8x64xf32>
    %18 = math.log %17 : vector<8x64xf32>
    %19 = vector.broadcast %1 : f32 to vector<8x64xf32>
    %20 = arith.mulf %19, %18 : vector<8x64xf32>
    %21 = math.exp %20 : vector<8x64xf32>
    %22 = arith.truncf %21 : vector<8x64xf32> to vector<8x64xbf16>
    %c0_8 = arith.constant 0 : index
    %c0_9 = arith.constant 0 : index
    %23 = vector.load %arg4[%c0_8, %c0_9] : memref<64x32xbf16, #tpu.memory_space<vmem>>, vector<64x32xbf16>
    %cst_10 = arith.constant dense<0.000000e+00> : vector<8x32xf32>
    %24 = tpu.matmul %22, %23, %cst_10 {dimension_numbers = #tpu.dot_dimension_numbers<[1], [0], [0], [1], [0, 0, 1, 1], [], []>} : vector<8x64xbf16>, vector<64x32xbf16>, vector<8x32xf32> -> vector<8x32xf32>
    %c0_11 = arith.constant 0 : index
    %c0_12 = arith.constant 0 : index
    %25 = vector.load %arg5[%c0_11, %c0_12] : memref<1x32xf32, #tpu.memory_space<vmem>>, vector<1x32xf32>
    %26 = vector.broadcast %25 : vector<1x32xf32> to vector<8x32xf32>
    %27 = arith.addf %24, %26 : vector<8x32xf32>
    %c0_13 = arith.constant 0 : index
    %28 = memref.load %arg2[%c0_13] : memref<1xf32, #tpu.memory_space<smem>>
    %cst_14 = arith.constant 0.000000e+00 : f32
    %29 = vector.broadcast %cst_14 : f32 to vector<8x32xf32>
    %30 = arith.cmpf oge, %27, %29 : vector<8x32xf32>
    %31 = vector.broadcast %28 : f32 to vector<8x32xf32>
    %32 = arith.mulf %31, %27 : vector<8x32xf32>
    %33 = arith.select %30, %27, %32 : vector<8x32xi1>, vector<8x32xf32>
    %34 = arith.mulf %33, %33 : vector<8x32xf32>
    %cst_15 = arith.constant dense<0.000000e+00> : vector<8xf32>
    %35 = vector.multi_reduction <add>, %34, %cst_15 [1] : vector<8x32xf32> to vector<8xf32>
    %36 = vector.shape_cast %35 : vector<8xf32> to vector<8x1xf32>
    %cst_16 = arith.constant 1.000000e-24 : f32
    %37 = vector.broadcast %cst_16 : f32 to vector<8x1xf32>
    %38 = arith.maximumf %36, %37 : vector<8x1xf32>
    %39 = math.rsqrt %38 : vector<8x1xf32>
    %40 = vector.broadcast %39 : vector<8x1xf32> to vector<8x32xf32>
    %41 = arith.mulf %33, %40 : vector<8x32xf32>
    %c0_17 = arith.constant 0 : index
    %c0_18 = arith.constant 0 : index
    %42 = vector.load %arg6[%c0_17, %c0_18] : memref<8x32xf32, #tpu.memory_space<vmem>>, vector<8x32xf32>
    tpu.vector_store %arg6[%c0_17, %c0_18], %41 {strides = array<i32>} : memref<8x32xf32, #tpu.memory_space<vmem>>, vector<8x32xf32>,
    return
  }
  func.func @transform_0(%arg0: i32) -> i32 {
    %c0_i32 = arith.constant 0 : i32
    %c0_i32_0 = arith.constant 0 : i32
    return %c0_i32 : i32
  }
  func.func @transform_1(%arg0: i32) -> i32 {
    %c0_i32 = arith.constant 0 : i32
    %c0_i32_0 = arith.constant 0 : i32
    return %c0_i32 : i32
  }
  func.func @transform_2(%arg0: i32) -> (i32, i32, i32) {
    %c0_i32 = arith.constant 0 : i32
    %c0_i32_0 = arith.constant 0 : i32
    %c0_i32_1 = arith.constant 0 : i32
    return %arg0, %c0_i32, %c0_i32_0 : i32, i32, i32
  }
  func.func @transform_3(%arg0: i32) -> (i32, i32) {
    %c0_i32 = arith.constant 0 : i32
    %c0_i32_0 = arith.constant 0 : i32
    %c0_i32_1 = arith.constant 0 : i32
    return %c0_i32, %c0_i32_0 : i32, i32
  }
  func.func @transform_4(%arg0: i32) -> (i32, i32) {
    %c0_i32 = arith.constant 0 : i32
    %c0_i32_0 = arith.constant 0 : i32
    %c0_i32_1 = arith.constant 0 : i32
    return %c0_i32, %c0_i32_0 : i32, i32
  }
  func.func @transform_5(%arg0: i32) -> (i32, i32) {
    %c0_i32 = arith.constant 0 : i32
    %c0_i32_0 = arith.constant 0 : i32
    return %arg0, %c0_i32 : i32, i32
  }
}

module attributes {stable_mosaic.version = 11 : i64} {
  func.func @_head_kernel(%arg0: i32, %arg1: i32, %arg2: memref<8x32xf32, #tpu.memory_space<vmem>>, %arg3: memref<1x32x128xbf16, #tpu.memory_space<vmem>>, %arg4: memref<8x128xf32, #tpu.memory_space<vmem>>) attributes {dimension_semantics = [#tpu.dimension_semantics<parallel>, #tpu.dimension_semantics<parallel>], iteration_bounds = array<i64: 1, 1>, scalar_prefetch = 0 : i64, scratch_operands = 0 : i64, tpu.core_type = #tpu.core_type<tc>, window_params = [{transform_indices = @transform_0, window_bounds = array<i64: 8, 32>}, {transform_indices = @transform_1, window_bounds = array<i64: 1, 32, 128>}, {transform_indices = @transform_2, window_bounds = array<i64: 8, 128>}]} {
    %c0 = arith.constant 0 : index
    %c0_0 = arith.constant 0 : index
    %0 = vector.load %arg2[%c0, %c0_0] : memref<8x32xf32, #tpu.memory_space<vmem>>, vector<8x32xf32>
    %1 = arith.truncf %0 : vector<8x32xf32> to vector<8x32xbf16>
    %c0_1 = arith.constant 0 : index
    %c0_2 = arith.constant 0 : index
    %c0_3 = arith.constant 0 : index
    %2 = vector.load %arg3[%c0_1, %c0_2, %c0_3] : memref<1x32x128xbf16, #tpu.memory_space<vmem>>, vector<1x32x128xbf16>
    %3 = vector.shape_cast %2 : vector<1x32x128xbf16> to vector<32x128xbf16>
    %cst = arith.constant dense<0.000000e+00> : vector<8x128xf32>
    %4 = tpu.matmul %1, %3, %cst {dimension_numbers = #tpu.dot_dimension_numbers<[1], [0], [0], [1], [0, 0, 1, 1], [], []>} : vector<8x32xbf16>, vector<32x128xbf16>, vector<8x128xf32> -> vector<8x128xf32>
    %c0_4 = arith.constant 0 : index
    %c0_5 = arith.constant 0 : index
    %5 = vector.load %arg4[%c0_4, %c0_5] : memref<8x128xf32, #tpu.memory_space<vmem>>, vector<8x128xf32>
    tpu.vector_store %arg4[%c0_4, %c0_5], %4 {strides = array<i32>} : memref<8x128xf32, #tpu.memory_space<vmem>>, vector<8x128xf32>,
    return
  }
  func.func @transform_0(%arg0: i32, %arg1: i32) -> (i32, i32) {
    %c0_i32 = arith.constant 0 : i32
    %c0_i32_0 = arith.constant 0 : i32
    return %arg1, %c0_i32 : i32, i32
  }
  func.func @transform_1(%arg0: i32, %arg1: i32) -> (i32, i32, i32) {
    %c0_i32 = arith.constant 0 : i32
    %c0_i32_0 = arith.constant 0 : i32
    %c0_i32_1 = arith.constant 0 : i32
    return %arg0, %c0_i32, %c0_i32_0 : i32, i32, i32
  }
  func.func @transform_2(%arg0: i32, %arg1: i32) -> (i32, i32) {
    %c0_i32 = arith.constant 0 : i32
    return %arg1, %arg0 : i32, i32
  }
}

</mosaic_0001>

<bundles_post_ra>
// kernel: net_forward.3
= control target key start
LH: loop header
LB: loop body
LE: loop exit
PB: predicated region body
PF: predicated region fallthrough
CT: control target
= control target key end

     0   :  { %vm30_vm0 = vcmask 261120   ;;  %s90_s1 = inlined_call_operand.vmem [shape: bf16[1,32,128], index: 1, kind: input, shape index: {}]   ;;  %s91_s0 = inlined_call_operand.vmem [shape: f32[8,32], index: 0, kind: input, shape index: {}]   ;;  %s92_s2 = inlined_call_operand.vmem [shape: f32[8,128], index: 2, kind: output, shape index: {}]  }
   0x1   :  { %v62_v0 = vld [vmem:[%s90_s1 + $0x8] sm:$0xff]  ;;  %v61_v1 = vld [vmem:[%s90_s1] sm:$0xff] }
   0x2   :  { %40 = vmatpush.bf16.msra.mxu0 %v62_v0  ;;  %v12_v2 = vld [vmem:[%s91_s0] sm:$0xff] }
   0x3   :  { %v13_v3 = vpack.c.bf16 %v12_v2, %v12_v2 }
   0x6   :  { %41 = vmatpush.bf16.msra.mxu0 %v61_v1 }
   0x9   :  { %60 = vmatmul.msk.bf16.vlgmr.msra.gmra.mxu0 %vm30_vm0, %v13_v3 }
  0x86   :  { %v43_v4 = vpop.f32.mrf.mxu0 }
  0x87   :  { %47 = vst [vmem:[%s92_s2] sm:$0xff] %v43_v4 }
  0x8e   :  { %v45_v5 = vpop.f32.mrf.mxu0 }

// kernel: net_forward.2
= control target key start
LH: loop header
LB: loop body
LE: loop exit
PB: predicated region body
PF: predicated region fallthrough
CT: control target
= control target key end

     0   :  { %vm491_vm0 = vcmask 523264   ;;  %vm817_vm1 = vcmask 130112   ;;  %vm821_vm2 = vcmask 195712   ;;  %vm825_vm3 = vcmask 261312   ;;  %s1891_s2 = inlined_call_operand.vmem [shape: f32[8,64,64], index: 2, kind: input, shape index: {}]   ;;  %s1892_s0 = inlined_call_operand.<no memory space> [shape: f32[1], index: 0, kind: input, shape index: {}]   ;;  %s1893_s4 = inlined_call_operand.vmem [shape: f32[1,32], index: 4, kind: input, shape index: {}]   ;;  %s1894_s3 = inlined_call_operand.vmem [shape: bf16[64,32], index: 3, kind: input, shape index: {}]   ;;  %s1895_s1 = inlined_call_operand.<no memory space> [shape: f32[1], index: 1, kind: input, shape index: {}]   ;;  %s1896_s5 = inlined_call_operand.vmem [shape: f32[8,32], index: 5, kind: output, shape index: {}]  }
   0x1   :  { %v50_v0 = vld [vmem:[%s1891_s2 + $0x40] sm:$0xff]  ;;  %v44_v1 = vld [vmem:[%s1891_s2 + $0x10] sm:$0xff]  ;;  %v51_v6 = vld [vmem:[%s1891_s2 + $0x48] sm:$0xff]  ;;  %v1408_v22 = vstv %s1892_s0  ;;  %vm829_vm4 = vcmask 326912   ;;  %vm833_vm5 = vcmask 392512   ;;  %vm837_vm6 = vcmask 458112  }
   0x2   :  { %v42_v2 = vld [vmem:[%s1891_s2] sm:$0xff]  ;;  %v114_v3 = vmax.f32 %v50_v0, 1e-06  ;;  %v108_v4 = vmax.f32 %v44_v1, 1e-06  ;;  %v52_v7 = vld [vmem:[%s1891_s2 + $0x50] sm:$0xff]  ;;  %vm30_vm9 = vweird.f32 %v1408_v22 }
   0x3   :  { %v106_v5 = vmax.f32 %v42_v2, 1e-06  ;;  %v43_v8 = vld [vmem:[%s1891_s2 + $0x8] sm:$0xff]  ;;  %v115_v9 = vmax.f32 %v51_v6, 1e-06  ;;  %v45_v13 = vld [vmem:[%s1891_s2 + $0x18] sm:$0xff] }
   0x4   :  { %1075 = vlog2.f32 %v114_v3  ;;  %v116_v10 = vmax.f32 %v52_v7, 1e-06  ;;  %v107_v11 = vmax.f32 %v43_v8, 1e-06  ;;  %v59_v12 = vld [vmem:[%s1891_s2 + $0x88] sm:$0xff]  ;;  %v58_v14 = vld [vmem:[%s1891_s2 + $0x80] sm:$0xff] }
   0x5   :  { %1077 = vlog2.f32 %v108_v4  ;;  %v123_v15 = vmax.f32 %v59_v12, 1e-06  ;;  %v109_v16 = vmax.f32 %v45_v13, 1e-06  ;;  %v60_v17 = vld [vmem:[%s1891_s2 + $0x90] sm:$0xff]  ;;  %v66_v19 = vld [vmem:[%s1891_s2 + $0xc0] sm:$0xff] }
   0x6   :  { %1079 = vlog2.f32 %v106_v5  ;;  %v122_v18 = vmax.f32 %v58_v14, 1e-06  ;;  %v53_v20 = vld [vmem:[%s1891_s2 + $0x58] sm:$0xff]  ;;  %v124_v23 = vmax.f32 %v60_v17, 1e-06  ;;  %v46_v27 = vld [vmem:[%s1891_s2 + $0x20] sm:$0xff] }
   0x7   :  { %1081 = vlog2.f32 %v115_v9  ;;  %v130_v26 = vmax.f32 %v66_v19, 1e-06  ;;  %v117_v30 = vmax.f32 %v53_v20, 1e-06  ;;  %v110_v37 = vmax.f32 %v46_v27, 1e-06 }
   0x8   :  { %1083 = vlog2.f32 %v116_v10  ;;  %v54_v2 = vld [vmem:[%s1891_s2 + $0x60] sm:$0xff]  ;;  %v67_v7 = vld [vmem:[%s1891_s2 + $0xc8] sm:$0xff]  ;;  %v68_v12 = vld [vmem:[%s1891_s2 + $0xd0] sm:$0xff]  ;;  %vm841_vm7 = vcmask 523712   ;;  %vm948_vm8 = vcmask 1041409   ;;  %vm950_vm13 = vcmask 1042434  }
   0x9   :  { %1085 = vlog2.f32 %v107_v11  ;;  %v131_v19 = vmax.f32 %v67_v7, 1e-06  ;;  %v61_v20 = vld [vmem:[%s1891_s2 + $0x98] sm:$0xff]  ;;  %vm952_vm14 = vcmask 1043459   ;;  %vm954_vm15 = vcmask 1044484  }
   0xa   :  { %v1076_v21 = vpop.eup %1075  ;;  %1087 = vlog2.f32 %v123_v15  ;;  %v118_v15 = vmax.f32 %v54_v2, 1e-06 }
   0xb   :  { %v1078_v24 = vpop.eup %1077  ;;  %v187_v25 = vmul.f32 0.6931472, %v1076_v21  ;;  %1089 = vlog2.f32 %v109_v16  ;;  %v74_v16 = vld [vmem:[%s1891_s2 + $0x100] sm:$0xff] }
   0xc   :  { %v1080_v28 = vpop.eup %1079  ;;  %v175_v29 = vmul.f32 0.6931472, %v1078_v24  ;;  %1091 = vlog2.f32 %v122_v18  ;;  %v132_v24 = vmax.f32 %v68_v12, 1e-06  ;;  %v138_v27 = vmax.f32 %v74_v16, 1e-06 }
   0xd   :  { %v1082_v31 = vpop.eup %1081  ;;  %v307_v32 = vmul.f32 %v187_v25, %v1408_v22  ;;  %v171_v33 = vmul.f32 0.6931472, %v1080_v28  ;;  %1093 = vlog2.f32 %v124_v23 }
   0xe   :  { %v1084_v34 = vpop.eup %1083  ;;  %v301_v35 = vmul.f32 %v175_v29, %v1408_v22  ;;  %v189_v36 = vmul.f32 0.6931472, %v1082_v31  ;;  %1095 = vlog2.f32 %v130_v26  ;;  %v125_v29 = vmax.f32 %v61_v20, 1e-06 }
   0xf   :  { %v1086_v38 = vpop.eup %1085  ;;  %v379_v39 = vmul.f32 1.442695, %v307_v32  ;;  %v299_v40 = vmul.f32 %v171_v33, %v1408_v22  ;;  %v191_v41 = vmul.f32 0.6931472, %v1084_v34  ;;  %1097 = vlog2.f32 %v117_v30  ;;  %v47_v32 = vld [vmem:[%s1891_s2 + $0x28] sm:$0xff] }
  0x10   :  { %v1088_v42 = vpop.eup %1087  ;;  %v367_v43 = vmul.f32 1.442695, %v301_v35  ;;  %v308_v44 = vmul.f32 %v189_v36, %v1408_v22  ;;  %v173_v45 = vmul.f32 0.6931472, %v1086_v38  ;;  %v55_v36 = vld [vmem:[%s1891_s2 + $0x68] sm:$0xff] }
  0x11   :  { %v1090_v46 = vpop.eup %1089  ;;  %1099 = vpow2.f32 %v379_v39  ;;  %v363_v47 = vmul.f32 1.442695, %v299_v40  ;;  %v309_v48 = vmul.f32 %v191_v41, %v1408_v22  ;;  %v205_v49 = vmul.f32 0.6931472, %v1088_v42  ;;  %v75_v39 = vld [vmem:[%s1891_s2 + $0x108] sm:$0xff] }
  0x12   :  { %v1092_v50 = vpop.eup %1091  ;;  %1101 = vpow2.f32 %v367_v43  ;;  %v381_v51 = vmul.f32 1.442695, %v308_v44  ;;  %v300_v52 = vmul.f32 %v173_v45, %v1408_v22  ;;  %v177_v53 = vmul.f32 0.6931472, %v1090_v46 }
  0x13   :  { %1103 = vpow2.f32 %v363_v47  ;;  %v383_v54 = vmul.f32 1.442695, %v309_v48  ;;  %v316_v55 = vmul.f32 %v205_v49, %v1408_v22  ;;  %v203_v56 = vmul.f32 0.6931472, %v1092_v50  ;;  %v1094_v57 = vpop.eup %1093 }
  0x14   :  { %v365_v58 = vmul.f32 1.442695, %v300_v52  ;;  %v302_v59 = vmul.f32 %v177_v53, %v1408_v22  ;;  %1105 = vlog2.f32 %v110_v37  ;;  %v1096_v60 = vpop.eup %1095  ;;  %v207_v1 = vmul.f32 0.6931472, %v1094_v57  ;;  %v69_v52 = vld [vmem:[%s1891_s2 + $0xd8] sm:$0xff] }
  0x15   :  { %1107 = vpow2.f32 %v381_v51  ;;  %v315_v61 = vmul.f32 %v203_v56, %v1408_v22  ;;  %v1098_v62 = vpop.eup %1097  ;;  %v397_v0 = vmul.f32 1.442695, %v316_v55  ;;  %v219_v6 = vmul.f32 0.6931472, %v1096_v60 }
  0x16   :  { %1109 = vpow2.f32 %v383_v54  ;;  %v369_v5 = vmul.f32 1.442695, %v302_v59  ;;  %v193_v11 = vmul.f32 0.6931472, %v1098_v62  ;;  %v317_v18 = vmul.f32 %v207_v1, %v1408_v22 }
  0x17   :  { %v1100_v63 = vpop.eup %1099  ;;  %1111 = vpow2.f32 %v365_v58  ;;  %v395_v10 = vmul.f32 1.442695, %v315_v61  ;;  %v323_v23 = vmul.f32 %v219_v6, %v1408_v22  ;;  %v111_v41 = vmax.f32 %v47_v32, 1e-06  ;;  %v82_v32 = vld [vmem:[%s1891_s2 + $0x140] sm:$0xff] }
  0x18   :  { %v1102_v3 = vpop.eup %1101  ;;  %v516_v4 = vsel %vm491_vm0, %v1100_v63, 0.0  ;;  %1113 = vpow2.f32 %v397_v0  ;;  %v310_v26 = vmul.f32 %v193_v11, %v1408_v22  ;;  %v399_v31 = vmul.f32 1.442695, %v317_v18  ;;  %v76_v63 = vld [vmem:[%s1891_s2 + $0x110] sm:$0xff] }
  0x19   :  { %v1104_v8 = vpop.eup %1103  ;;  %517 = vadd.xlane.f32.xlu1 %v516_v4  ;;  %v498_v9 = vsel %vm491_vm0, %v1102_v3, 0.0  ;;  %1115 = vpow2.f32 %v369_v5  ;;  %v411_v34 = vmul.f32 1.442695, %v323_v23  ;;  %v119_v43 = vmax.f32 %v55_v36, 1e-06  ;;  %v62_v3 = vld [vmem:[%s1891_s2 + $0xa0] sm:$0xff] }
  0x1a   :  { %v1106_v13 = vpop.eup %1105  ;;  %499 = vadd.xlane.f32.xlu2 %v498_v9  ;;  %v492_v14 = vsel %vm491_vm0, %v1104_v8, 0.0  ;;  %1117 = vpow2.f32 %v395_v10  ;;  %v385_v38 = vmul.f32 1.442695, %v310_v26  ;;  %v139_v46 = vmax.f32 %v75_v39, 1e-06  ;;  %v83_v9 = vld [vmem:[%s1891_s2 + $0x148] sm:$0xff] }
  0x1b   :  { %v1108_v17 = vpop.eup %1107  ;;  %493 = vadd.xlane.f32.xlu0 %v492_v14  ;;  %1119 = vlog2.f32 %v118_v15  ;;  %v179_v35 = vmul.f32 0.6931472, %v1106_v13  ;;  %v133_v62 = vmax.f32 %v69_v52, 1e-06  ;;  %v140_v8 = vmax.f32 %v76_v63, 1e-06 }
  0x1c   :  { %v1110_v21 = vpop.eup %1109  ;;  %v519_v28 = vsel %vm491_vm0, %v1108_v17, 0.0  ;;  %1121 = vlog2.f32 %v131_v19  ;;  %v126_v12 = vmax.f32 %v62_v3, 1e-06  ;;  %v48_v13 = vld [vmem:[%s1891_s2 + $0x30] sm:$0xff]  ;;  %v147_v20 = vmax.f32 %v83_v9, 1e-06 }
  0x1d   :  { %v1112_v25 = vpop.eup %1111  ;;  %v522_v30 = vsel %vm491_vm0, %v1110_v21, 0.0  ;;  %1123 = vlog2.f32 %v132_v24  ;;  %v303_v45 = vmul.f32 %v179_v35, %v1408_v22  ;;  %v112_v24 = vmax.f32 %v48_v13, 1e-06  ;;  %v90_v9 = vld [vmem:[%s1891_s2 + $0x180] sm:$0xff]  ;;  %v77_v13 = vld [vmem:[%s1891_s2 + $0x118] sm:$0xff] }
  0x1e   :  { %v495_v33 = vsel %vm491_vm0, %v1112_v25, 0.0  ;;  %v1114_v37 = vpop.eup %1113  ;;  %1125 = vlog2.f32 %v138_v27  ;;  %v146_v39 = vmax.f32 %v82_v32, 1e-06 }
  0x1f   :  { %v1116_v40 = vpop.eup %1115  ;;  %1127 = vlog2.f32 %v125_v29  ;;  %v543_v50 = vsel %vm491_vm0, %v1114_v37, 0.0  ;;  %v371_v58 = vmul.f32 1.442695, %v303_v45 }
  0x20   :  { %v1118_v42 = vpop.eup %1117  ;;  %1129 = vpow2.f32 %v399_v31  ;;  %v501_v54 = vsel %vm491_vm0, %v1116_v40, 0.0 }
  0x21   :  { %520 = vadd.xlane.f32.xlu1 %v519_v28  ;;  %v1120_v44 = vpop.eup %1119  ;;  %1131 = vpow2.f32 %v411_v34  ;;  %v540_v57 = vsel %vm491_vm0, %v1118_v42, 0.0 }
  0x22   :  { %523 = vadd.xlane.f32.xlu2 %v522_v30  ;;  %v1122_v47 = vpop.eup %1121  ;;  %1133 = vpow2.f32 %v385_v38  ;;  %v195_v48 = vmul.f32 0.6931472, %v1120_v44 }
  0x23   :  { %496 = vadd.xlane.f32.xlu0 %v495_v33  ;;  %v1124_v49 = vpop.eup %1123  ;;  %v221_v51 = vmul.f32 0.6931472, %v1122_v47  ;;  %1135 = vlog2.f32 %v111_v41  ;;  %v70_v47 = vld [vmem:[%s1891_s2 + $0xe0] sm:$0xff] }
  0x24   :  { %v1126_v53 = vpop.eup %1125  ;;  %v311_v55 = vmul.f32 %v195_v48, %v1408_v22  ;;  %1137 = vlog2.f32 %v119_v43  ;;  %v223_v61 = vmul.f32 0.6931472, %v1124_v49  ;;  %v63_v43 = vld [vmem:[%s1891_s2 + $0xa8] sm:$0xff] }
  0x25   :  { %v1128_v56 = vpop.eup %1127  ;;  %v324_v59 = vmul.f32 %v221_v51, %v1408_v22  ;;  %1139 = vlog2.f32 %v139_v46  ;;  %v235_v2 = vmul.f32 0.6931472, %v1126_v53  ;;  %v56_v51 = vld [vmem:[%s1891_s2 + $0x70] sm:$0xff] }
  0x26   :  { %v1130_v60 = vpop.eup %1129  ;;  %v387_v1 = vmul.f32 1.442695, %v311_v55  ;;  %v209_v6 = vmul.f32 0.6931472, %v1128_v56  ;;  %1141 = vpow2.f32 %v371_v58  ;;  %v325_v11 = vmul.f32 %v223_v61, %v1408_v22 }
  0x27   :  { %v1132_v0 = vpop.eup %1131  ;;  %v413_v5 = vmul.f32 1.442695, %v324_v59  ;;  %1143 = vlog2.f32 %v133_v62  ;;  %v546_v15 = vsel %vm491_vm0, %v1130_v60, 0.0  ;;  %v331_v17 = vmul.f32 %v235_v2, %v1408_v22 }
  0x28   :  { %v1134_v4 = vpop.eup %1133  ;;  %v564_v16 = vsel %vm491_vm0, %v1132_v0, 0.0  ;;  %1145 = vpow2.f32 %v387_v1  ;;  %v318_v18 = vmul.f32 %v209_v6, %v1408_v22  ;;  %v415_v25 = vmul.f32 1.442695, %v325_v11  ;;  %v84_v6 = vld [vmem:[%s1891_s2 + $0x150] sm:$0xff] }
  0x29   :  { %544 = vadd.xlane.f32.xlu1 %v543_v50  ;;  %v1136_v7 = vpop.eup %1135  ;;  %1147 = vpow2.f32 %v413_v5  ;;  %v525_v21 = vsel %vm491_vm0, %v1134_v4, 0.0  ;;  %v427_v28 = vmul.f32 1.442695, %v331_v17  ;;  %v134_v56 = vmax.f32 %v70_v47, 1e-06 }
  0x2a   :  { %502 = vadd.xlane.f32.xlu2 %v501_v54  ;;  %v1138_v10 = vpop.eup %1137  ;;  %v181_v19 = vmul.f32 0.6931472, %v1136_v7  ;;  %1149 = vlog2.f32 %v140_v8  ;;  %v401_v30 = vmul.f32 1.442695, %v318_v18  ;;  %v127_v54 = vmax.f32 %v63_v43, 1e-06 }
  0x2b   :  { %541 = vadd.xlane.f32.xlu0 %v540_v57  ;;  %v1140_v14 = vpop.eup %1139  ;;  %v197_v23 = vmul.f32 0.6931472, %v1138_v10  ;;  %1151 = vlog2.f32 %v126_v12  ;;  %v120_v59 = vmax.f32 %v56_v51, 1e-06 }
  0x2c   :  { %v237_v26 = vmul.f32 0.6931472, %v1140_v14  ;;  %v1142_v27 = vpop.eup %1141  ;;  %v304_v31 = vmul.f32 %v181_v19, %v1408_v22  ;;  %1153 = vlog2.f32 %v147_v20  ;;  %v154_v19 = vmax.f32 %v90_v9, 1e-06 }
  0x2d   :  { %v1144_v29 = vpop.eup %1143  ;;  %v312_v34 = vmul.f32 %v197_v23, %v1408_v22  ;;  %1155 = vlog2.f32 %v112_v24  ;;  %v504_v38 = vsel %vm491_vm0, %v1142_v27, 0.0 }
  0x2e   :  { %v1146_v33 = vpop.eup %1145  ;;  %1157 = vpow2.f32 %v415_v25  ;;  %v332_v36 = vmul.f32 %v237_v26, %v1408_v22  ;;  %v373_v42 = vmul.f32 1.442695, %v304_v31  ;;  %v225_v46 = vmul.f32 0.6931472, %v1144_v29  ;;  %v49_v26 = vld [vmem:[%s1891_s2 + $0x38] sm:$0xff] }
  0x2f   :  { %v1148_v35 = vpop.eup %1147  ;;  %1159 = vpow2.f32 %v427_v28  ;;  %v528_v41 = vsel %vm491_vm0, %v1146_v33, 0.0  ;;  %v389_v45 = vmul.f32 1.442695, %v312_v34 }
  0x30   :  { %v1150_v37 = vpop.eup %1149  ;;  %1161 = vpow2.f32 %v401_v30  ;;  %v567_v44 = vsel %vm491_vm0, %v1148_v35, 0.0  ;;  %v429_v49 = vmul.f32 1.442695, %v332_v36  ;;  %v326_v58 = vmul.f32 %v225_v46, %v1408_v22  ;;  %v57_v30 = vld [vmem:[%s1891_s2 + $0x78] sm:$0xff] }
  0x31   :  { %547 = vadd.xlane.f32.xlu1 %v546_v15  ;;  %v1152_v40 = vpop.eup %1151  ;;  %v239_v50 = vmul.f32 0.6931472, %v1150_v37  ;;  %1163 = vlog2.f32 %v146_v39  ;;  %v113_v35 = vmax.f32 %v49_v26, 1e-06  ;;  %v121_v37 = vmax.f32 %v57_v30, 1e-06 }
  0x32   :  { %565 = vadd.xlane.f32.xlu2 %v564_v16  ;;  %v1154_v48 = vpop.eup %1153  ;;  %v211_v53 = vmul.f32 0.6931472, %v1152_v40  ;;  %1165 = vpow2.f32 %v373_v42  ;;  %v417_v4 = vmul.f32 1.442695, %v326_v58  ;;  %v148_v16 = vmax.f32 %v84_v6, 1e-06 }
  0x33   :  { %526 = vadd.xlane.f32.xlu0 %v525_v21  ;;  %v1156_v52 = vpop.eup %1155  ;;  %1167 = vpow2.f32 %v389_v45  ;;  %v333_v61 = vmul.f32 %v239_v50, %v1408_v22  ;;  %v253_v0 = vmul.f32 0.6931472, %v1154_v48  ;;  %v141_v21 = vmax.f32 %v77_v13, 1e-06  ;;  %v85_v26 = vld [vmem:[%s1891_s2 + $0x158] sm:$0xff] }
  0x34   :  { %v1158_v55 = vpop.eup %1157  ;;  %1169 = vpow2.f32 %v429_v49  ;;  %v319_v63 = vmul.f32 %v211_v53, %v1408_v22  ;;  %v183_v5 = vmul.f32 0.6931472, %v1156_v52  ;;  %v71_v52 = vld [vmem:[%s1891_s2 + $0xe8] sm:$0xff] }
  0x35   :  { %v1160_v57 = vpop.eup %1159  ;;  %v570_v62 = vsel %vm491_vm0, %v1158_v55, 0.0  ;;  %1171 = vlog2.f32 %v127_v54  ;;  %v431_v8 = vmul.f32 1.442695, %v333_v61  ;;  %v340_v12 = vmul.f32 %v253_v0, %v1408_v22 }
  0x36   :  { %v1162_v60 = vpop.eup %1161  ;;  %v588_v1 = vsel %vm491_vm0, %v1160_v57, 0.0  ;;  %1173 = vlog2.f32 %v134_v56  ;;  %v403_v11 = vmul.f32 1.442695, %v319_v63  ;;  %v305_v18 = vmul.f32 %v183_v5, %v1408_v22  ;;  %v78_v56 = vld [vmem:[%s1891_s2 + $0x120] sm:$0xff] }
  0x37   :  { %v1164_v2 = vpop.eup %1163  ;;  %v549_v3 = vsel %vm491_vm0, %v1162_v60, 0.0  ;;  %1175 = vlog2.f32 %v120_v59  ;;  %v445_v25 = vmul.f32 1.442695, %v340_v12  ;;  %v64_v60 = vld [vmem:[%s1891_s2 + $0xb0] sm:$0xff]  ;;  %v135_v63 = vmax.f32 %v71_v52, 1e-06 }
  0x38   :  { %v1166_v7 = vpop.eup %1165  ;;  %v251_v15 = vmul.f32 0.6931472, %v1164_v2  ;;  %1177 = vpow2.f32 %v417_v4  ;;  %v375_v32 = vmul.f32 1.442695, %v305_v18  ;;  %v128_v4 = vmax.f32 %v64_v60, 1e-06 }
  0x39   :  { %505 = vadd.xlane.f32.xlu1 %v504_v38  ;;  %v1168_v10 = vpop.eup %1167  ;;  %1179 = vpow2.f32 %v431_v8  ;;  %v507_v24 = vsel %vm491_vm0, %v1166_v7, 0.0  ;;  %v98_v18 = vld [vmem:[%s1891_s2 + $0x1c0] sm:$0xff] }
  0x3a   :  { %529 = vadd.xlane.f32.xlu2 %v528_v41  ;;  %v1170_v14 = vpop.eup %1169  ;;  %1181 = vpow2.f32 %v403_v11  ;;  %v531_v27 = vsel %vm491_vm0, %v1168_v10, 0.0  ;;  %v339_v28 = vmul.f32 %v251_v15, %v1408_v22  ;;  %v91_v41 = vld [vmem:[%s1891_s2 + $0x188] sm:$0xff]  ;;  %v92_v15 = vld [vmem:[%s1891_s2 + $0x190] sm:$0xff]  ;;  %v86_v60 = vld [vmem:[%s1891_s2 + $0x160] sm:$0xff] }
  0x3b   :  { %568 = vadd.xlane.f32.xlu0 %v567_v44  ;;  %v1172_v17 = vpop.eup %1171  ;;  %1183 = vlog2.f32 %v148_v16  ;;  %v591_v31 = vsel %vm491_vm0, %v1170_v14, 0.0  ;;  %v155_v48 = vmax.f32 %v91_v41, 1e-06 }
  0x3c   :  { %v1174_v20 = vpop.eup %1173  ;;  %v213_v29 = vmul.f32 0.6931472, %v1172_v17  ;;  %1185 = vlog2.f32 %v154_v19  ;;  %v443_v39 = vmul.f32 1.442695, %v339_v28 }
  0x3d   :  { %v1176_v23 = vpop.eup %1175  ;;  %v227_v33 = vmul.f32 0.6931472, %v1174_v20  ;;  %1187 = vlog2.f32 %v141_v21 }
  0x3e   :  { %v199_v34 = vmul.f32 0.6931472, %v1176_v23  ;;  %v1178_v36 = vpop.eup %1177  ;;  %1189 = vpow2.f32 %v445_v25  ;;  %v320_v40 = vmul.f32 %v213_v29, %v1408_v22  ;;  %v156_v25 = vmax.f32 %v92_v15, 1e-06 }
  0x3f   :  { %v1180_v38 = vpop.eup %1179  ;;  %1191 = vpow2.f32 %v375_v32  ;;  %v327_v43 = vmul.f32 %v227_v33, %v1408_v22  ;;  %v573_v47 = vsel %vm491_vm0, %v1178_v36, 0.0  ;;  %v162_v29 = vmax.f32 %v98_v18, 1e-06 }
  0x40   :  { %v1182_v42 = vpop.eup %1181  ;;  %v313_v45 = vmul.f32 %v199_v34, %v1408_v22  ;;  %1193 = vlog2.f32 %v113_v35  ;;  %v594_v50 = vsel %vm491_vm0, %v1180_v38, 0.0  ;;  %v405_v51 = vmul.f32 1.442695, %v320_v40  ;;  %v65_v35 = vld [vmem:[%s1891_s2 + $0xb8] sm:$0xff] }
  0x41   :  { %571 = vadd.xlane.f32.xlu1 %v570_v62  ;;  %v1184_v44 = vpop.eup %1183  ;;  %1195 = vlog2.f32 %v121_v37  ;;  %v552_v53 = vsel %vm491_vm0, %v1182_v42, 0.0  ;;  %v419_v54 = vmul.f32 1.442695, %v327_v43  ;;  %v149_v34 = vmax.f32 %v85_v26, 1e-06 }
  0x42   :  { %589 = vadd.xlane.f32.xlu2 %v588_v1  ;;  %v1186_v46 = vpop.eup %1185  ;;  %1197 = vpow2.f32 %v443_v39  ;;  %v255_v55 = vmul.f32 0.6931472, %v1184_v44  ;;  %v391_v58 = vmul.f32 1.442695, %v313_v45  ;;  %v142_v1 = vmax.f32 %v78_v56, 1e-06 }
  0x43   :  { %550 = vadd.xlane.f32.xlu0 %v549_v3  ;;  %v1188_v49 = vpop.eup %1187  ;;  %v267_v59 = vmul.f32 0.6931472, %v1186_v46  ;;  %1199 = vlog2.f32 %v155_v48  ;;  %v72_v39 = vld [vmem:[%s1891_s2 + $0xf0] sm:$0xff]  ;;  %v129_v44 = vmax.f32 %v65_v35, 1e-06  ;;  %v99_v45 = vld [vmem:[%s1891_s2 + $0x1c8] sm:$0xff] }
  0x44   :  { %v1190_v57 = vpop.eup %1189  ;;  %v241_v62 = vmul.f32 0.6931472, %v1188_v49  ;;  %1201 = vpow2.f32 %v405_v51  ;;  %v341_v3 = vmul.f32 %v255_v55, %v1408_v22 }
  0x45   :  { %v1192_v61 = vpop.eup %1191  ;;  %1203 = vpow2.f32 %v419_v54  ;;  %v347_v6 = vmul.f32 %v267_v59, %v1408_v22  ;;  %v615_v7 = vsel %vm491_vm0, %v1190_v57, 0.0 }
  0x46   :  { %v1194_v0 = vpop.eup %1193  ;;  %1205 = vpow2.f32 %v391_v58  ;;  %v334_v8 = vmul.f32 %v241_v62, %v1408_v22  ;;  %v510_v10 = vsel %vm491_vm0, %v1192_v61, 0.0  ;;  %v447_v13 = vmul.f32 1.442695, %v341_v3 }
  0x47   :  { %v1196_v2 = vpop.eup %1195  ;;  %v185_v9 = vmul.f32 0.6931472, %v1194_v0  ;;  %1207 = vlog2.f32 %v135_v63  ;;  %v459_v17 = vmul.f32 1.442695, %v347_v6  ;;  %v150_v6 = vmax.f32 %v86_v60, 1e-06 }
  0x48   :  { %v1198_v5 = vpop.eup %1197  ;;  %1209 = vlog2.f32 %v142_v1  ;;  %v201_v14 = vmul.f32 0.6931472, %v1196_v2  ;;  %v433_v20 = vmul.f32 1.442695, %v334_v8  ;;  %v93_v1 = vld [vmem:[%s1891_s2 + $0x198] sm:$0xff] }
  0x49   :  { %508 = vadd.xlane.f32.xlu1 %v507_v24  ;;  %v1200_v11 = vpop.eup %1199  ;;  %v612_v12 = vsel %vm491_vm0, %v1198_v5, 0.0  ;;  %1211 = vlog2.f32 %v128_v4  ;;  %v306_v21 = vmul.f32 %v185_v9, %v1408_v22 }
  0x4a   :  { %532 = vadd.xlane.f32.xlu2 %v531_v27  ;;  %v1202_v16 = vpop.eup %1201  ;;  %v269_v24 = vmul.f32 0.6931472, %v1200_v11  ;;  %1213 = vpow2.f32 %v447_v13  ;;  %v314_v28 = vmul.f32 %v201_v14, %v1408_v22  ;;  %v73_v11 = vld [vmem:[%s1891_s2 + $0xf8] sm:$0xff]  ;;  %v80_v14 = vld [vmem:[%s1891_s2 + $0x130] sm:$0xff] }
  0x4b   :  { %592 = vadd.xlane.f32.xlu0 %v591_v31  ;;  %v1204_v19 = vpop.eup %1203  ;;  %1215 = vpow2.f32 %v459_v17  ;;  %v555_v32 = vsel %vm491_vm0, %v1202_v16, 0.0  ;;  %v377_v33 = vmul.f32 1.442695, %v306_v21  ;;  %v144_v26 = vmax.f32 %v80_v14, 1e-06 }
  0x4c   :  { %v1206_v23 = vpop.eup %1205  ;;  %1217 = vpow2.f32 %v433_v20  ;;  %v576_v36 = vsel %vm491_vm0, %v1204_v19, 0.0  ;;  %v348_v37 = vmul.f32 %v269_v24, %v1408_v22  ;;  %v393_v41 = vmul.f32 1.442695, %v314_v28 }
  0x4d   :  { %v1208_v27 = vpop.eup %1207  ;;  %1219 = vlog2.f32 %v156_v25  ;;  %v534_v40 = vsel %vm491_vm0, %v1206_v23, 0.0  ;;  %v137_v23 = vmax.f32 %v73_v11, 1e-06 }
  0x4e   :  { %v1210_v30 = vpop.eup %1209  ;;  %v229_v38 = vmul.f32 0.6931472, %v1208_v27  ;;  %1221 = vlog2.f32 %v162_v29  ;;  %v461_v49 = vmul.f32 1.442695, %v348_v37  ;;  %v100_v27 = vld [vmem:[%s1891_s2 + $0x1d0] sm:$0xff] }
  0x4f   :  { %v1212_v31 = vpop.eup %1211  ;;  %v243_v42 = vmul.f32 0.6931472, %v1210_v30  ;;  %1223 = vlog2.f32 %v149_v34  ;;  %v164_v35 = vmax.f32 %v100_v27, 1e-06 }
  0x50   :  { %v215_v43 = vmul.f32 0.6931472, %v1212_v31  ;;  %v1214_v46 = vpop.eup %1213  ;;  %1225 = vpow2.f32 %v377_v33 }
  0x51   :  { %574 = vadd.xlane.f32.xlu1 %v573_v47  ;;  %v136_v47 = vmax.f32 %v72_v39, 1e-06  ;;  %v1216_v48 = vpop.eup %1215  ;;  %1227 = vpow2.f32 %v393_v41  ;;  %v335_v52 = vmul.f32 %v243_v42, %v1408_v22  ;;  %v618_v57 = vsel %vm491_vm0, %v1214_v46, 0.0  ;;  %v94_v42 = vld [vmem:[%s1891_s2 + $0x1a0] sm:$0xff] }
  0x52   :  { %595 = vadd.xlane.f32.xlu2 %v594_v50  ;;  %v328_v50 = vmul.f32 %v229_v38, %v1408_v22  ;;  %v1218_v51 = vpop.eup %1217  ;;  %v321_v55 = vmul.f32 %v215_v43, %v1408_v22  ;;  %1229 = vlog2.f32 %v129_v44  ;;  %v636_v58 = vsel %vm491_vm0, %v1216_v48, 0.0 }
  0x53   :  { %553 = vadd.xlane.f32.xlu0 %v552_v53  ;;  %v163_v53 = vmax.f32 %v99_v45, 1e-06  ;;  %v1220_v54 = vpop.eup %1219  ;;  %1231 = vlog2.f32 %v136_v47  ;;  %v597_v62 = vsel %vm491_vm0, %v1218_v51, 0.0  ;;  %v435_v63 = vmul.f32 1.442695, %v335_v52 }
  0x54   :  { %v1222_v56 = vpop.eup %1221  ;;  %1233 = vpow2.f32 %v461_v49  ;;  %v421_v59 = vmul.f32 1.442695, %v328_v50  ;;  %v271_v0 = vmul.f32 0.6931472, %v1220_v54  ;;  %v407_v3 = vmul.f32 1.442695, %v321_v55 }
  0x55   :  { %v1224_v61 = vpop.eup %1223  ;;  %1235 = vlog2.f32 %v163_v53  ;;  %v283_v4 = vmul.f32 0.6931472, %v1222_v56  ;;  %v101_v49 = vld [vmem:[%s1891_s2 + $0x1d8] sm:$0xff]  ;;  %v158_v53 = vmax.f32 %v94_v42, 1e-06  ;;  %v87_v54 = vld [vmem:[%s1891_s2 + $0x168] sm:$0xff] }
  0x56   :  { %v1226_v2 = vpop.eup %1225  ;;  %1237 = vpow2.f32 %v421_v59  ;;  %v257_v9 = vmul.f32 0.6931472, %v1224_v61  ;;  %v349_v13 = vmul.f32 %v271_v0, %v1408_v22  ;;  %v165_v59 = vmax.f32 %v101_v49, 1e-06 }
  0x57   :  { %v1228_v5 = vpop.eup %1227  ;;  %1239 = vpow2.f32 %v435_v63  ;;  %v513_v16 = vsel %vm491_vm0, %v1226_v2, 0.0  ;;  %v355_v17 = vmul.f32 %v283_v4, %v1408_v22  ;;  %v151_v63 = vmax.f32 %v87_v54, 1e-06 }
  0x58   :  { %v1230_v8 = vpop.eup %1229  ;;  %1241 = vpow2.f32 %v407_v3  ;;  %v537_v20 = vsel %vm491_vm0, %v1228_v5, 0.0  ;;  %v342_v24 = vmul.f32 %v257_v9, %v1408_v22  ;;  %v463_v29 = vmul.f32 1.442695, %v349_v13 }
  0x59   :  { %616 = vadd.xlane.f32.xlu1 %v615_v7  ;;  %v79_v7 = vld [vmem:[%s1891_s2 + $0x128] sm:$0xff]  ;;  %v217_v21 = vmul.f32 0.6931472, %v1230_v8  ;;  %1243 = vlog2.f32 %v150_v6  ;;  %v475_v31 = vmul.f32 1.442695, %v355_v17 }
  0x5a   :  { %511 = vadd.xlane.f32.xlu2 %v510_v10  ;;  %v157_v10 = vmax.f32 %v93_v1, 1e-06  ;;  %v143_v18 = vmax.f32 %v79_v7, 1e-06  ;;  %v449_v37 = vmul.f32 1.442695, %v342_v24 }
  0x5b   :  { %613 = vadd.xlane.f32.xlu0 %v612_v12  ;;  %v1232_v12 = vpop.eup %1231  ;;  %v322_v34 = vmul.f32 %v217_v21, %v1408_v22  ;;  %v88_v7 = vld [vmem:[%s1891_s2 + $0x170] sm:$0xff]  ;;  %v81_v24 = vld [vmem:[%s1891_s2 + $0x138] sm:$0xff] }
  0x5c   :  { %v1234_v15 = vpop.eup %1233  ;;  %v231_v25 = vmul.f32 0.6931472, %v1232_v12  ;;  %1245 = vlog2.f32 %v157_v10 }
  0x5d   :  { %v1236_v19 = vpop.eup %1235  ;;  %v639_v28 = vsel %vm491_vm0, %v1234_v15, 0.0  ;;  %1247 = vlog2.f32 %v143_v18  ;;  %v409_v44 = vmul.f32 1.442695, %v322_v34 }
  0x5e   :  { %v1238_v30 = vpop.eup %1237  ;;  %1249 = vlog2.f32 %v137_v23  ;;  %v329_v38 = vmul.f32 %v231_v25, %v1408_v22 }
  0x5f   :  { %v1240_v33 = vpop.eup %1239  ;;  %1251 = vlog2.f32 %v144_v26  ;;  %v579_v43 = vsel %vm491_vm0, %v1238_v30, 0.0 }
  0x60   :  { %1253 = vpow2.f32 %v463_v29  ;;  %v600_v46 = vsel %vm491_vm0, %v1240_v33, 0.0  ;;  %v423_v47 = vmul.f32 1.442695, %v329_v38  ;;  %v96_v38 = vld [vmem:[%s1891_s2 + $0x1b0] sm:$0xff] }
  0x61   :  { %556 = vadd.xlane.f32.xlu1 %v555_v32  ;;  %v285_v32 = vmul.f32 0.6931472, %v1236_v19  ;;  %1255 = vpow2.f32 %v475_v31  ;;  %v95_v19 = vld [vmem:[%s1891_s2 + $0x1a8] sm:$0xff]  ;;  %v145_v31 = vmax.f32 %v81_v24, 1e-06 }
  0x62   :  { %577 = vadd.xlane.f32.xlu2 %v576_v36  ;;  %v1242_v36 = vpop.eup %1241  ;;  %1257 = vlog2.f32 %v164_v35  ;;  %v159_v29 = vmax.f32 %v95_v19, 1e-06  ;;  %v89_v35 = vld [vmem:[%s1891_s2 + $0x178] sm:$0xff] }
  0x63   :  { %535 = vadd.xlane.f32.xlu0 %v534_v40  ;;  %v1244_v39 = vpop.eup %1243  ;;  %v356_v41 = vmul.f32 %v285_v32, %v1408_v22  ;;  %1259 = vpow2.f32 %v449_v37  ;;  %v558_v51 = vsel %vm491_vm0, %v1242_v36, 0.0 }
  0x64   :  { %v1246_v40 = vpop.eup %1245  ;;  %v259_v48 = vmul.f32 0.6931472, %v1244_v39  ;;  %1261 = vpow2.f32 %v409_v44 }
  0x65   :  { %v1248_v45 = vpop.eup %1247  ;;  %v273_v52 = vmul.f32 0.6931472, %v1246_v40  ;;  %v477_v56 = vmul.f32 1.442695, %v356_v41  ;;  %1263 = vpow2.f32 %v423_v47  ;;  %v812_v40 = vlaneseq  ;;  %v102_v47 = vld [vmem:[%s1891_s2 + $0x1e0] sm:$0xff] }
  0x66   :  { %v1250_v50 = vpop.eup %1249  ;;  %v343_v61 = vmul.f32 %v259_v48, %v1408_v22  ;;  %1265 = vlog2.f32 %v158_v53 }
  0x67   :  { %v1252_v55 = vpop.eup %1251  ;;  %v350_v1 = vmul.f32 %v273_v52, %v1408_v22  ;;  %1267 = vpow2.f32 %v477_v56  ;;  %v1653_v52 = vand.u32 127, %v812_v40 }
  0x68   :  { %v247_v2 = vmul.f32 0.6931472, %v1252_v55  ;;  %1269 = vlog2.f32 %v165_v59  ;;  %v451_v8 = vmul.f32 1.442695, %v343_v61  ;;  %v166_v59 = vmax.f32 %v102_v47, 1e-06 }
  0x69   :  { %619 = vadd.xlane.f32.xlu1 %v618_v57  ;;  %v1254_v57 = vpop.eup %1253  ;;  %1271 = vlog2.f32 %v151_v63  ;;  %v465_v13 = vmul.f32 1.442695, %v350_v1 }
  0x6a   :  { %637 = vadd.xlane.f32.xlu2 %v636_v58  ;;  %v245_v58 = vmul.f32 0.6931472, %v1248_v45  ;;  %v1256_v60 = vpop.eup %1255  ;;  %v642_v4 = vsel %vm491_vm0, %v1254_v57, 0.0  ;;  %v337_v14 = vmul.f32 %v247_v2, %v1408_v22  ;;  %1273 = vpow2.f32 %v451_v8 }
  0x6b   :  { %598 = vadd.xlane.f32.xlu0 %v597_v62  ;;  %v233_v62 = vmul.f32 0.6931472, %v1250_v50  ;;  %v1258_v0 = vpop.eup %1257  ;;  %v660_v5 = vsel %vm491_vm0, %v1256_v60, 0.0  ;;  %1275 = vpow2.f32 %v465_v13 }
  0x6c   :  { %v1260_v3 = vpop.eup %1259  ;;  %v336_v6 = vmul.f32 %v245_v58, %v1408_v22  ;;  %v287_v10 = vmul.f32 0.6931472, %v1258_v0  ;;  %v439_v26 = vmul.f32 1.442695, %v337_v14  ;;  %v1658_v0 = vadd.s32 4294967280, %v1653_v52 }
  0x6d   :  { %v330_v9 = vmul.f32 %v233_v62, %v1408_v22  ;;  %v1262_v11 = vpop.eup %1261  ;;  %v621_v12 = vsel %vm491_vm0, %v1260_v3, 0.0  ;;  %v97_v3 = vld [vmem:[%s1891_s2 + $0x1b8] sm:$0xff] }
  0x6e   :  { %v1264_v15 = vpop.eup %1263  ;;  %v437_v18 = vmul.f32 1.442695, %v336_v6  ;;  %v357_v23 = vmul.f32 %v287_v10, %v1408_v22  ;;  %v561_v30 = vsel %vm491_vm0, %v1262_v11, 0.0  ;;  %v1665_v6 = vadd.s32 4294967288, %v1653_v52  ;;  %v104_v10 = vld [vmem:[%s1891_s2 + $0x1f0] sm:$0xff] }
  0x6f   :  { %v1266_v17 = vpop.eup %1265  ;;  %v425_v21 = vmul.f32 1.442695, %v330_v9  ;;  %v582_v32 = vsel %vm491_vm0, %v1264_v15, 0.0  ;;  %v161_v13 = vmax.f32 %v97_v3, 1e-06 }
  0x70   :  { %v479_v33 = vmul.f32 1.442695, %v357_v23 }
  0x71   :  { %514 = vadd.xlane.f32.xlu1 %v513_v16  ;;  %v152_v16 = vmax.f32 %v88_v7, 1e-06  ;;  %v103_v7 = vld [vmem:[%s1891_s2 + $0x1e8] sm:$0xff] }
  0x72   :  { %538 = vadd.xlane.f32.xlu2 %v537_v20  ;;  %v1268_v20 = vpop.eup %1267 }
  0x73   :  { %640 = vadd.xlane.f32.xlu0 %v639_v28  ;;  %v1270_v25 = vpop.eup %1269  ;;  %v275_v28 = vmul.f32 0.6931472, %v1266_v17  ;;  %1277 = vlog2.f32 %v152_v16  ;;  %v663_v36 = vsel %vm491_vm0, %v1268_v20, 0.0 }
  0x74   :  { %v1272_v27 = vpop.eup %1271  ;;  %1279 = vpow2.f32 %v437_v18  ;;  %v289_v34 = vmul.f32 0.6931472, %v1270_v25  ;;  %v167_v18 = vmax.f32 %v103_v7, 1e-06  ;;  %v168_v25 = vmax.f32 %v104_v10, 1e-06 }
  0x75   :  { %1281 = vpow2.f32 %v425_v21  ;;  %v261_v37 = vmul.f32 0.6931472, %v1272_v27  ;;  %v1274_v39 = vpop.eup %1273  ;;  %v351_v41 = vmul.f32 %v275_v28, %v1408_v22 }
  0x76   :  { %1283 = vpow2.f32 %v439_v26  ;;  %v1276_v42 = vpop.eup %1275  ;;  %v358_v45 = vmul.f32 %v289_v34, %v1408_v22  ;;  %v624_v57 = vsel %vm491_vm0, %v1274_v39, 0.0 }
  0x77   :  { %1285 = vlog2.f32 %v159_v29  ;;  %v344_v50 = vmul.f32 %v261_v37, %v1408_v22  ;;  %v467_v54 = vmul.f32 1.442695, %v351_v41  ;;  %v645_v61 = vsel %vm491_vm0, %v1276_v42, 0.0 }
  0x78   :  { %1287 = vlog2.f32 %v145_v31  ;;  %v481_v62 = vmul.f32 1.442695, %v358_v45 }
  0x79   :  { %580 = vadd.xlane.f32.xlu1 %v579_v43  ;;  %v153_v43 = vmax.f32 %v89_v35, 1e-06  ;;  %v1278_v44 = vpop.eup %1277  ;;  %1289 = vpow2.f32 %v479_v33  ;;  %v453_v2 = vmul.f32 1.442695, %v344_v50  ;;  %v105_v50 = vld [vmem:[%s1891_s2 + $0x1f8] sm:$0xff] }
  0x7a   :  { %601 = vadd.xlane.f32.xlu2 %v600_v46  ;;  %v160_v46 = vmax.f32 %v96_v38, 1e-06  ;;  %v1280_v48 = vpop.eup %1279  ;;  %v263_v58 = vmul.f32 0.6931472, %v1278_v44 }
  0x7b   :  { %559 = vadd.xlane.f32.xlu0 %v558_v51  ;;  %v1282_v51 = vpop.eup %1281  ;;  %1291 = vlog2.f32 %v153_v43  ;;  %v603_v1 = vsel %vm491_vm0, %v1280_v48, 0.0 }
  0x7c   :  { %v1284_v55 = vpop.eup %1283  ;;  %1293 = vlog2.f32 %v160_v46  ;;  %v345_v8 = vmul.f32 %v263_v58, %v1408_v22  ;;  %v585_v11 = vsel %vm491_vm0, %v1282_v51, 0.0 }
  0x7d   :  { %v1286_v60 = vpop.eup %1285  ;;  %1295 = vpow2.f32 %v467_v54  ;;  %v606_v16 = vsel %vm491_vm0, %v1284_v55, 0.0 }
  0x7e   :  { %v1288_v63 = vpop.eup %1287  ;;  %v277_v9 = vmul.f32 0.6931472, %v1286_v60  ;;  %1297 = vlog2.f32 %v166_v59  ;;  %v455_v29 = vmul.f32 1.442695, %v345_v8 }
  0x7f   :  { %1299 = vpow2.f32 %v481_v62 }
  0x80   :  { %1301 = vpow2.f32 %v453_v2  ;;  %v169_v2 = vmax.f32 %v105_v50, 1e-06 }
  0x81   :  { %643 = vadd.xlane.f32.xlu1 %v642_v4  ;;  %v1290_v4 = vpop.eup %1289  ;;  %1303 = vlog2.f32 %v161_v13 }
  0x82   :  { %661 = vadd.xlane.f32.xlu2 %v660_v5  ;;  %v1292_v14 = vpop.eup %1291  ;;  %v666_v17 = vsel %vm491_vm0, %v1290_v4, 0.0  ;;  %1305 = vlog2.f32 %v167_v18 }
  0x83   :  { %622 = vadd.xlane.f32.xlu0 %v621_v12  ;;  %v249_v12 = vmul.f32 0.6931472, %v1288_v63  ;;  %v1294_v19 = vpop.eup %1293  ;;  %v265_v37 = vmul.f32 0.6931472, %v1292_v14  ;;  %1307 = vlog2.f32 %v168_v25 }
  0x84   :  { %v1296_v31 = vpop.eup %1295  ;;  %v279_v38 = vmul.f32 0.6931472, %v1294_v19  ;;  %1309 = vpow2.f32 %v455_v29 }
  0x85   :  { %v338_v34 = vmul.f32 %v249_v12, %v1408_v22  ;;  %v1298_v35 = vpop.eup %1297  ;;  %v346_v55 = vmul.f32 %v265_v37, %v1408_v22  ;;  %v648_v59 = vsel %vm491_vm0, %v1296_v31, 0.0 }
  0x86   :  { %v1300_v39 = vpop.eup %1299  ;;  %v353_v60 = vmul.f32 %v279_v38, %v1408_v22 }
  0x87   :  { %v1302_v43 = vpop.eup %1301  ;;  %v441_v48 = vmul.f32 1.442695, %v338_v34  ;;  %v457_v10 = vmul.f32 1.442695, %v346_v55 }
  0x88   :  { %v471_v13 = vmul.f32 1.442695, %v353_v60 }
  0x89   :  { %562 = vadd.xlane.f32.xlu1 %v561_v30  ;;  %v352_v30 = vmul.f32 %v277_v9, %v1408_v22  ;;  %v627_v9 = vsel %vm491_vm0, %v1302_v43, 0.0 }
  0x8a   :  { %583 = vadd.xlane.f32.xlu2 %v582_v32 }
  0x8b   :  { %664 = vadd.xlane.f32.xlu0 %v663_v36  ;;  %v469_v46 = vmul.f32 1.442695, %v352_v30 }
  0x8c   :  { %v518_v49 = vpop.xlane.xlu1 %517 }
  0x8d   :  { %v500_v53 = vpop.xlane.xlu2 %499  ;;  %v692_v5 = vmul.f32 0.015625, %v518_v49  ;;  %v291_v49 = vmul.f32 0.6931472, %v1298_v35  ;;  %1311 = vpow2.f32 %v469_v46  ;;  %v1720_v46 = vadd.s32 4294967264, %v1653_v52 }
  0x8e   :  { %v494_v56 = vpop.xlane.xlu0 %493  ;;  %v686_v26 = vmul.f32 0.015625, %v500_v53  ;;  %v1694_v53 = vadd.s32 4294967272, %v1653_v52  ;;  %1313 = vpow2.f32 %v441_v48 }
  0x8f   :  { %v843_v20 = vperm.slane %v692_v5, %v1653_v52  ;;  %v684_v21 = vmul.f32 0.015625, %v494_v56  ;;  %v1304_v56 = vpop.eup %1303  ;;  %v359_v7 = vmul.f32 %v291_v49, %v1408_v22  ;;  %1315 = vlog2.f32 %v169_v2 }
  0x90   :  { %v820_v44 = vperm.slane %v686_v26, %v1658_v0  ;;  %1317 = vpow2.f32 %v457_v10 }
  0x91   :  { %625 = vadd.xlane.f32.xlu1 %v624_v57  ;;  %v814_v40 = vperm.slane %v684_v21, %v1653_v52  ;;  %v483_v19 = vmul.f32 1.442695, %v359_v7  ;;  %1319 = vpow2.f32 %v471_v13 }
  0x92   :  { %646 = vadd.xlane.f32.xlu2 %v645_v61  ;;  %v1306_v61 = vpop.eup %1305 }
  0x93   :  { %604 = vadd.xlane.f32.xlu0 %v603_v1  ;;  %v669_v1 = vsel %vm491_vm0, %v1300_v39, 0.0  ;;  %v1308_v3 = vpop.eup %1307  ;;  %v293_v14 = vmul.f32 0.6931472, %v1306_v61  ;;  %1321 = vpow2.f32 %v483_v19 }
  0x94   :  { %v521_v15 = vpop.xlane.xlu1 %520 }
  0x95   :  { %v693_v23 = vmul.f32 0.015625, %v521_v15  ;;  %v524_v24 = vpop.xlane.xlu2 %523 }
  0x96   :  { %v694_v27 = vmul.f32 0.015625, %v524_v24  ;;  %v497_v28 = vpop.xlane.xlu0 %496 }
  0x97   :  { %v844_v32 = vperm.slane %v693_v23, %v1665_v6  ;;  %v685_v33 = vmul.f32 0.015625, %v497_v28 }
  0x98   :  { %v846_v36 = vperm.slane %v694_v27, %v1658_v0  ;;  %v360_v27 = vmul.f32 %v293_v14, %v1408_v22 }
  0x99   :  { %v845_v41 = vsel %vm817_vm1, %v844_v32, %v843_v20  ;;  %v816_v42 = vperm.slane %v685_v33, %v1665_v6  ;;  %586 = vadd.xlane.f32.xlu1 %v585_v11  ;;  %v281_v11 = vmul.f32 0.6931472, %v1304_v56 }
  0x9a   :  { %v1687_v45 = vsel %vm821_vm2, %v846_v36, %v845_v41  ;;  %607 = vadd.xlane.f32.xlu2 %v606_v16  ;;  %v295_v16 = vmul.f32 0.6931472, %v1308_v3  ;;  %v485_v39 = vmul.f32 1.442695, %v360_v27 }
  0x9b   :  { %v818_v47 = vsel %vm817_vm1, %v816_v42, %v814_v40  ;;  %667 = vadd.xlane.f32.xlu0 %v666_v17  ;;  %v1310_v17 = vpop.eup %1309  ;;  %v354_v23 = vmul.f32 %v281_v11, %v1408_v22 }
  0x9c   :  { %v545_v51 = vpop.xlane.xlu1 %544  ;;  %v822_v54 = vsel %vm821_vm2, %v820_v44, %v818_v47  ;;  %v1312_v20 = vpop.eup %1311  ;;  %v630_v29 = vsel %vm491_vm0, %v1310_v17, 0.0  ;;  %v361_v30 = vmul.f32 %v295_v16, %v1408_v22 }
  0x9d   :  { %v701_v57 = vmul.f32 0.015625, %v545_v51  ;;  %v503_v58 = vpop.xlane.xlu2 %502  ;;  %v1314_v24 = vpop.eup %1313  ;;  %v651_v33 = vsel %vm491_vm0, %v1312_v20, 0.0  ;;  %v473_v36 = vmul.f32 1.442695, %v354_v23  ;;  %v1741_v23 = vadd.s32 4294967256, %v1653_v52 }
  0x9e   :  { %v687_v62 = vmul.f32 0.015625, %v503_v58  ;;  %v542_v63 = vpop.xlane.xlu0 %541  ;;  %v1316_v34 = vpop.eup %1315  ;;  %v609_v35 = vsel %vm491_vm0, %v1314_v24, 0.0  ;;  %v487_v41 = vmul.f32 1.442695, %v361_v30 }
  0x9f   :  { %v859_v4 = vperm.slane %v701_v57, %v1665_v6  ;;  %v700_v5 = vmul.f32 0.015625, %v542_v63  ;;  %v1318_v40 = vpop.eup %1317  ;;  %v297_v47 = vmul.f32 0.6931472, %v1316_v34  ;;  %1323 = vpow2.f32 %v473_v36 }
  0xa0   :  { %v824_v8 = vperm.slane %v687_v62, %v1694_v53  ;;  %v1320_v42 = vpop.eup %1319  ;;  %1325 = vpow2.f32 %v485_v39  ;;  %v633_v56 = vsel %vm491_vm0, %v1318_v40, 0.0 }
  0xa1   :  { %v858_v12 = vperm.slane %v700_v5, %v1653_v52  ;;  %649 = vadd.xlane.f32.xlu1 %v648_v59  ;;  %v1322_v49 = vpop.eup %1321  ;;  %v654_v57 = vsel %vm491_vm0, %v1320_v42, 0.0  ;;  %1327 = vpow2.f32 %v487_v41  ;;  %v362_v60 = vmul.f32 %v297_v47, %v1408_v22 }
  0xa2   :  { %v826_v15 = vsel %vm825_vm3, %v824_v8, %v822_v54  ;;  %670 = vadd.xlane.f32.xlu2 %v669_v1  ;;  %v672_v62 = vsel %vm491_vm0, %v1322_v49, 0.0 }
  0xa3   :  { %v860_v18 = vsel %vm817_vm1, %v859_v4, %v858_v12  ;;  %628 = vadd.xlane.f32.xlu0 %v627_v9  ;;  %v489_v7 = vmul.f32 1.442695, %v362_v60 }
  0xa4   :  { %v548_v21 = vpop.xlane.xlu1 %547 }
  0xa5   :  { %v702_v25 = vmul.f32 0.015625, %v548_v21  ;;  %v566_v26 = vpop.xlane.xlu2 %565  ;;  %v1324_v2 = vpop.eup %1323  ;;  %1329 = vpow2.f32 %v489_v7 }
  0xa6   :  { %v527_v28 = vpop.xlane.xlu0 %526  ;;  %v708_v43 = vmul.f32 0.015625, %v566_v26  ;;  %v1326_v4 = vpop.eup %1325  ;;  %v657_v13 = vsel %vm491_vm0, %v1324_v2, 0.0  ;;  %1331 = vrcp.f32 %v1408_v22 }
  0xa7   :  { %v861_v31 = vperm.slane %v702_v25, %v1658_v0  ;;  %v695_v32 = vmul.f32 0.015625, %v527_v28  ;;  %v1328_v8 = vpop.eup %1327  ;;  %v675_v17 = vsel %vm491_vm0, %v1326_v4, 0.0 }
  0xa8   :  { %v678_v16 = vsel %vm491_vm0, %v1328_v8, 0.0 }
  0xa9   :  { %v862_v37 = vsel %vm821_vm2, %v861_v31, %v860_v18  ;;  %v848_v38 = vperm.slane %v695_v32, %v1694_v53  ;;  %631 = vadd.xlane.f32.xlu1 %v630_v29 }
  0xaa   :  { %652 = vadd.xlane.f32.xlu2 %v651_v33 }
  0xab   :  { %v849_v44 = vsel %vm825_vm3, %v848_v38, %v1687_v45  ;;  %610 = vadd.xlane.f32.xlu0 %v609_v35  ;;  %v873_v45 = vperm.slane %v708_v43, %v1653_v52  ;;  %v1330_v25 = vpop.eup %1329 }
  0xac   :  { %v506_v48 = vpop.xlane.xlu1 %505  ;;  %v681_v34 = vsel %vm491_vm0, %v1330_v25, 0.0 }
  0xad   :  { %v688_v50 = vmul.f32 0.015625, %v506_v48  ;;  %v530_v51 = vpop.xlane.xlu2 %529 }
  0xae   :  { %v696_v54 = vmul.f32 0.015625, %v530_v51  ;;  %v569_v55 = vpop.xlane.xlu0 %568 }
  0xaf   :  { %v828_v58 = vperm.slane %v688_v50, %v1720_v46  ;;  %v709_v59 = vmul.f32 0.015625, %v569_v55 }
  0xb0   :  { %v850_v61 = vperm.slane %v696_v54, %v1720_v46 }
  0xb1   :  { %v830_v63 = vsel %vm829_vm4, %v828_v58, %v826_v15  ;;  %v874_v1 = vperm.slane %v709_v59, %v1665_v6  ;;  %634 = vadd.xlane.f32.xlu1 %v633_v56  ;;  %v1758_v56 = vadd.s32 4294967248, %v1653_v52 }
  0xb2   :  { %v851_v3 = vsel %vm829_vm4, %v850_v61, %v849_v44  ;;  %655 = vadd.xlane.f32.xlu2 %v654_v57 }
  0xb3   :  { %v875_v5 = vsel %vm817_vm1, %v874_v1, %v873_v45  ;;  %673 = vadd.xlane.f32.xlu0 %v672_v62 }
  0xb4   :  { %v572_v9 = vpop.xlane.xlu1 %571 }
  0xb5   :  { %v710_v10 = vmul.f32 0.015625, %v572_v9  ;;  %v590_v11 = vpop.xlane.xlu2 %589 }
  0xb6   :  { %v551_v12 = vpop.xlane.xlu0 %550  ;;  %v716_v20 = vmul.f32 0.015625, %v590_v11 }
  0xb7   :  { %v876_v14 = vperm.slane %v710_v10, %v1658_v0  ;;  %v703_v15 = vmul.f32 0.015625, %v551_v12 }
  0xb8   :  { %v888_v30 = vperm.slane %v716_v20, %v1653_v52 }
  0xb9   :  { %v877_v18 = vsel %vm821_vm2, %v876_v14, %v875_v5  ;;  %v863_v19 = vperm.slane %v703_v15, %v1694_v53  ;;  %658 = vadd.xlane.f32.xlu1 %v657_v13 }
  0xba   :  { %679 = vadd.xlane.f32.xlu2 %v678_v16 }
  0xbb   :  { %v864_v21 = vsel %vm825_vm3, %v863_v19, %v862_v37  ;;  %676 = vadd.xlane.f32.xlu0 %v675_v17 }
  0xbc   :  { %v509_v24 = vpop.xlane.xlu1 %508 }
  0xbd   :  { %v689_v26 = vmul.f32 0.015625, %v509_v24  ;;  %v533_v27 = vpop.xlane.xlu2 %532 }
  0xbe   :  { %v697_v28 = vmul.f32 0.015625, %v533_v27  ;;  %v593_v29 = vpop.xlane.xlu0 %592 }
  0xbf   :  { %v832_v31 = vperm.slane %v689_v26, %v1741_v23  ;;  %v717_v32 = vmul.f32 0.015625, %v593_v29 }
  0xc0   :  { %v852_v33 = vperm.slane %v697_v28, %v1741_v23  ;;  %v1782_v28 = vadd.s32 4294967240, %v1653_v52 }
  0xc1   :  { %v834_v35 = vsel %vm833_vm5, %v832_v31, %v830_v63  ;;  %v889_v36 = vperm.slane %v717_v32, %v1665_v6 }
  0xc2   :  { %v853_v37 = vsel %vm833_vm5, %v852_v33, %v851_v3 }
  0xc3   :  { %v890_v38 = vsel %vm817_vm1, %v889_v36, %v888_v30  ;;  %682 = vadd.xlane.f32.xlu0 %v681_v34 }
  0xc4   :  { %v575_v39 = vpop.xlane.xlu1 %574 }
  0xc5   :  { %v711_v40 = vmul.f32 0.015625, %v575_v39  ;;  %v596_v41 = vpop.xlane.xlu2 %595 }
  0xc6   :  { %v718_v42 = vmul.f32 0.015625, %v596_v41  ;;  %v554_v43 = vpop.xlane.xlu0 %553 }
  0xc7   :  { %v878_v44 = vperm.slane %v711_v40, %v1694_v53  ;;  %v704_v47 = vmul.f32 0.015625, %v554_v43 }
  0xc8   :  { %v891_v48 = vperm.slane %v718_v42, %v1658_v0 }
  0xc9   :  { %v879_v49 = vsel %vm825_vm3, %v878_v44, %v877_v18  ;;  %v865_v50 = vperm.slane %v704_v47, %v1720_v46 }
  0xca   :  { %v892_v51 = vsel %vm821_vm2, %v891_v48, %v890_v38 }
  0xcb   :  { %v866_v54 = vsel %vm829_vm4, %v865_v50, %v864_v21 }
  0xcc   :  { %v617_v55 = vpop.xlane.xlu1 %616 }
  0xcd   :  { %v725_v57 = vmul.f32 0.015625, %v617_v55  ;;  %v512_v45 = vpop.xlane.xlu2 %511 }
  0xce   :  { %v690_v58 = vmul.f32 0.015625, %v512_v45  ;;  %v614_v59 = vpop.xlane.xlu0 %613 }
  0xcf   :  { %v904_v60 = vperm.slane %v725_v57, %v1665_v6  ;;  %v724_v61 = vmul.f32 0.015625, %v614_v59 }
  0xd0   :  { %v836_v62 = vperm.slane %v690_v58, %v1758_v56 }
  0xd1   :  { %v903_v63 = vperm.slane %v724_v61, %v1653_v52 }
  0xd2   :  { %v838_v1 = vsel %vm837_vm6, %v836_v62, %v834_v35  ;;  %v34_v62 = vand.u32 2147483647, %v1408_v22 }
  0xd3   :  { %v905_v2 = vsel %vm817_vm1, %v904_v60, %v903_v63  ;;  %v36_v60 = vand.u32 2147483648, %v1408_v22 }
  0xd4   :  { %v557_v3 = vpop.xlane.xlu1 %556  ;;  %vm35_vm12 = vcmp.eq.f32.partialorder %v34_v62, 8.507059e+37 }
  0xd5   :  { %v705_v4 = vmul.f32 0.015625, %v557_v3  ;;  %v578_v5 = vpop.xlane.xlu2 %577  ;;  %v37_v63 = vor.u32 1.1754944e-38, %v36_v60 }
  0xd6   :  { %v712_v7 = vmul.f32 0.015625, %v578_v5  ;;  %v536_v8 = vpop.xlane.xlu0 %535 }
  0xd7   :  { %v867_v9 = vperm.slane %v705_v4, %v1741_v23  ;;  %v698_v10 = vmul.f32 0.015625, %v536_v8 }
  0xd8   :  { %v880_v11 = vperm.slane %v712_v7, %v1720_v46 }
  0xd9   :  { %v868_v12 = vsel %vm833_vm5, %v867_v9, %v866_v54  ;;  %v854_v13 = vperm.slane %v698_v10, %v1758_v56 }
  0xda   :  { %v1770_v14 = vsel %vm829_vm4, %v880_v11, %v879_v49  ;;  %v1332_v49 = vpop.eup %1331 }
  0xdb   :  { %v855_v15 = vsel %vm837_vm6, %v854_v13, %v853_v37  ;;  %vm31_vm10 = vweird.f32 %v1332_v49 }
  0xdc   :  { %v620_v16 = vpop.xlane.xlu1 %619  ;;  %vm32_vm11 = vmor %vm30_vm9, %vm31_vm10  ;;  %vm958_vm9 = vcmask 1046534  }
  0xdd   :  { %v726_v17 = vmul.f32 0.015625, %v620_v16  ;;  %v638_v18 = vpop.xlane.xlu2 %637 }
  0xde   :  { %v599_v19 = vpop.xlane.xlu0 %598  ;;  %v732_v26 = vmul.f32 0.015625, %v638_v18 }
  0xdf   :  { %v906_v20 = vperm.slane %v726_v17, %v1658_v0  ;;  %v719_v21 = vmul.f32 0.015625, %v599_v19 }
  0xe0   :  { %v918_v34 = vperm.slane %v732_v26, %v1653_v52 }
  0xe1   :  { %v1775_v24 = vsel %vm821_vm2, %v906_v20, %v905_v2  ;;  %v893_v25 = vperm.slane %v719_v21, %v1694_v53 }
  0xe3   :  { %v1779_v27 = vsel %vm825_vm3, %v893_v25, %v892_v51  ;;  %v26_v51 = vmul.f32 %v1332_v49, %v1408_v22 }
  0xe4   :  { %v515_v29 = vpop.xlane.xlu1 %514 }
  0xe5   :  { %v691_v30 = vmul.f32 0.015625, %v515_v29  ;;  %v539_v31 = vpop.xlane.xlu2 %538  ;;  %v27_v55 = vsub.f32 1.0, %v26_v51 }
  0xe6   :  { %v699_v32 = vmul.f32 0.015625, %v539_v31  ;;  %v641_v33 = vpop.xlane.xlu0 %640 }
  0xe7   :  { %v840_v35 = vperm.slane %v691_v30, %v1782_v28  ;;  %v733_v36 = vmul.f32 0.015625, %v641_v33  ;;  %v28_v58 = vmul.f32 %v1332_v49, %v27_v55 }
  0xe8   :  { %v856_v37 = vperm.slane %v699_v32, %v1782_v28 }
  0xe9   :  { %v842_v38 = vsel %vm841_vm7, %v840_v35, %v838_v1  ;;  %v919_v39 = vperm.slane %v733_v36, %v1665_v6  ;;  %v29_v61 = vadd.f32 %v1332_v49, %v28_v58 }
  0xea   :  { %v857_v40 = vsel %vm841_vm7, %v856_v37, %v855_v15 }
  0xeb   :  { %v949_v41 = vsel %vm948_vm8, %v857_v40, %v842_v38  ;;  %v1792_v42 = vsel %vm817_vm1, %v919_v39, %v918_v34  ;;  %v33_v1 = vsel %vm32_vm11, %v1332_v49, %v29_v61  ;;  %vm956_vm8 = vcmask 1045509  }
  0xec   :  { %v581_v43 = vpop.xlane.xlu1 %580  ;;  %v38_v2 = vsel %vm35_vm12, %v37_v63, %v33_v1 }
  0xed   :  { %v602_v44 = vpop.xlane.xlu2 %601  ;;  %1072 = vpush %v38_v2  ;;  %v713_v13 = vmul.f32 0.015625, %v581_v43 }
  0xee   :  { %v560_v47 = vpop.xlane.xlu0 %559  ;;  %v720_v35 = vmul.f32 0.015625, %v602_v44 }
  0xef   :  { %v706_v48 = vmul.f32 0.015625, %v560_v47  ;;  %v882_v16 = vperm.slane %v713_v13, %v1741_v23 }
  0xf0   :  { %v895_v38 = vperm.slane %v720_v35, %v1720_v46 }
  0xf1   :  { %v869_v50 = vperm.slane %v706_v48, %v1758_v56  ;;  %v883_v25 = vsel %vm833_vm5, %v882_v16, %v1770_v14 }
  0xf2   :  { %v896_v51 = vsel %vm829_vm4, %v895_v38, %v1779_v27 }
  0xf3   :  { %v870_v54 = vsel %vm837_vm6, %v869_v50, %v868_v12 }
  0xf4   :  { %v1797_v57 = vpop.xlane.xlu1 %643 }
  0xf5   :  { %v1799_v45 = vpop.xlane.xlu2 %661  ;;  %v734_v63 = vmul.f32 0.015625, %v1797_v57 }
  0xf6   :  { %v623_v59 = vpop.xlane.xlu0 %622 }
  0xf7   :  { %v727_v40 = vmul.f32 0.015625, %v623_v59 }
  0xf9   :  { %v908_v44 = vperm.slane %v727_v40, %v1694_v53 }
  0xfc   :  { %v563_v3 = vpop.xlane.xlu1 %562 }
  0xfd   :  { %v707_v4 = vmul.f32 0.015625, %v563_v3  ;;  %v584_v5 = vpop.xlane.xlu2 %583  ;;  %v909_v3 = vsel %vm825_vm3, %v908_v44, %v1775_v24 }
  0xfe   :  { %v1804_v7 = vpop.xlane.xlu0 %664  ;;  %v714_v15 = vmul.f32 0.015625, %v584_v5 }
  0xff   :  { %v871_v8 = vperm.slane %v707_v4, %v1782_v28 }
 0x100   :  { %v884_v17 = vperm.slane %v714_v15, %v1758_v56  ;;  %v921_v15 = vperm.slane %v734_v63, %v1658_v0 }
 0x101   :  { %v872_v9 = vsel %vm841_vm7, %v871_v8, %v870_v54 }
 0x102   :  { %v951_v10 = vsel %vm950_vm13, %v872_v9, %v949_v41  ;;  %v885_v29 = vsel %vm837_vm6, %v884_v17, %v883_v25 }
 0x104   :  { %v626_v11 = vpop.xlane.xlu1 %625 }
 0x105   :  { %v647_v12 = vpop.xlane.xlu2 %646  ;;  %v728_v43 = vmul.f32 0.015625, %v626_v11 }
 0x106   :  { %v605_v22 = vpop.xlane.xlu0 %604  ;;  %v735_v4 = vmul.f32 0.015625, %v647_v12 }
 0x107   :  { %v721_v36 = vmul.f32 0.015625, %v605_v22  ;;  %v910_v59 = vperm.slane %v728_v43, %v1720_v46 }
 0x108   :  { %v923_v24 = vperm.slane %v735_v4, %v1694_v53 }
 0x109   :  { %v897_v14 = vperm.slane %v721_v36, %v1741_v23  ;;  %v911_v9 = vsel %vm829_vm4, %v910_v59, %v909_v3  ;;  %v1068_v59 = vld [vmem:[%s1894_s3] sm:$0xff] }
 0x10b   :  { %v898_v55 = vsel %vm833_vm5, %v897_v14, %v896_v51  ;;  %v1069_v51 = vld [vmem:[%s1894_s3 + $0x8] sm:$0xff] }
 0x10c   :  { %v587_v18 = vpop.xlane.xlu1 %586 }
 0x10d   :  { %v715_v19 = vmul.f32 0.015625, %v587_v18  ;;  %v608_v20 = vpop.xlane.xlu2 %607  ;;  %v740_v18 = vmul.f32 0.015625, %v1799_v45 }
 0x10e   :  { %v668_v21 = vpop.xlane.xlu0 %667  ;;  %v722_v37 = vmul.f32 0.015625, %v608_v20 }
 0x10f   :  { %v886_v26 = vperm.slane %v715_v19, %v1782_v28  ;;  %v741_v19 = vmul.f32 0.015625, %v1804_v7  ;;  %v933_v36 = vperm.slane %v740_v18, %v1653_v52 }
 0x110   :  { %v899_v47 = vperm.slane %v722_v37, %v1758_v56 }
 0x111   :  { %v887_v30 = vsel %vm841_vm7, %v886_v26, %v885_v29  ;;  %v1071_v26 = vld [vmem:[%s1894_s3 + $0x18] sm:$0xff]  ;;  %v934_v37 = vperm.slane %v741_v19, %v1665_v6 }
 0x112   :  { %v953_v31 = vsel %vm952_vm14, %v887_v30, %v951_v10  ;;  %v900_v60 = vsel %vm837_vm6, %v899_v47, %v898_v55  ;;  %v922_v30 = vsel %vm821_vm2, %v921_v15, %v1792_v42  ;;  %1015 = vmatpush.bf16.msra.mxu0 %v1071_v26  ;;  %v1070_v42 = vld [vmem:[%s1894_s3 + $0x10] sm:$0xff] }
 0x113   :  { %v924_v45 = vsel %vm825_vm3, %v923_v24, %v922_v30 }
 0x114   :  { %v650_v32 = vpop.xlane.xlu1 %649 }
 0x115   :  { %v671_v33 = vpop.xlane.xlu2 %670  ;;  %v736_v10 = vmul.f32 0.015625, %v650_v32 }
 0x116   :  { %v629_v34 = vpop.xlane.xlu0 %628  ;;  %v743_v7 = vmul.f32 0.015625, %v671_v33  ;;  %1016 = vmatpush.bf16.msra.mxu0 %v1070_v42 }
 0x117   :  { %v729_v49 = vmul.f32 0.015625, %v629_v34  ;;  %v925_v20 = vperm.slane %v736_v10, %v1720_v46 }
 0x118   :  { %v938_v6 = vperm.slane %v743_v7, %v1694_v53 }
 0x119   :  { %v912_v61 = vperm.slane %v729_v49, %v1741_v23  ;;  %v926_v38 = vsel %vm829_vm4, %v925_v20, %v924_v45 }
 0x11a   :  { %1017 = vmatpush.bf16.msra.mxu0 %v1069_v51 }
 0x11b   :  { %v913_v22 = vsel %vm833_vm5, %v912_v61, %v911_v9 }
 0x11c   :  { %v632_v39 = vpop.xlane.xlu1 %631 }
 0x11d   :  { %v653_v41 = vpop.xlane.xlu2 %652  ;;  %v730_v54 = vmul.f32 0.015625, %v632_v39 }
 0x11e   :  { %v611_v48 = vpop.xlane.xlu0 %610  ;;  %v737_v13 = vmul.f32 0.015625, %v653_v41  ;;  %1018 = vmatpush.bf16.msra.mxu0 %v1068_v59  ;;  %s1073_s25 = spop %1072 }
 0x11f   :  { %v723_v50 = vmul.f32 0.015625, %v611_v48  ;;  %v914_v27 = vperm.slane %v730_v54, %v1758_v56  ;;  %v935_v54 = vsel %vm817_vm1, %v934_v37, %v933_v36  ;;  %vm960_vm1 = vcmask 1047559  }
 0x120   :  { %v927_v29 = vperm.slane %v737_v13, %v1741_v23 }
 0x121   :  { %v901_v58 = vperm.slane %v723_v50, %v1782_v28  ;;  %v915_v16 = vsel %vm837_vm6, %v914_v27, %v913_v22 }
 0x123   :  { %v902_v62 = vsel %vm841_vm7, %v901_v58, %v900_v60 }
 0x124   :  { %v955_v1 = vsel %vm954_vm15, %v902_v62, %v953_v31  ;;  %v635_v2 = vpop.xlane.xlu1 %634  ;;  %v742_v31 = vmul.f32 0.015625, %v668_v21  ;;  %v928_v21 = vsel %vm833_vm5, %v927_v29, %v926_v38 }
 0x125   :  { %v731_v5 = vmul.f32 0.015625, %v635_v2  ;;  %v656_v8 = vpop.xlane.xlu2 %655  ;;  %v967_v2 = vstv %s1073_s25 }
 0x126   :  { %v674_v11 = vpop.xlane.xlu0 %673  ;;  %v738_v17 = vmul.f32 0.015625, %v656_v8  ;;  %v936_v43 = vperm.slane %v742_v31, %v1658_v0 }
 0x127   :  { %v916_v57 = vperm.slane %v731_v5, %v1782_v28  ;;  %v744_v39 = vmul.f32 0.015625, %v674_v11  ;;  %v1026_v11 = vstv %s1895_s1 }
 0x128   :  { %v929_v32 = vperm.slane %v738_v17, %v1758_v56  ;;  %v937_v0 = vsel %vm821_vm2, %v936_v43, %v935_v54 }
 0x129   :  { %v917_v12 = vsel %vm841_vm7, %v916_v57, %v915_v16  ;;  %v940_v48 = vperm.slane %v744_v39, %v1720_v46  ;;  %v939_v55 = vsel %vm825_vm3, %v938_v6, %v937_v0  ;;  %vm1030_vm3 = vcmask 261120  }
 0x12a   :  { %v957_v25 = vsel %vm956_vm8, %v917_v12, %v955_v1  ;;  %v930_v52 = vsel %vm837_vm6, %v929_v32, %v928_v21 }
 0x12b   :  { %v941_v53 = vsel %vm829_vm4, %v940_v48, %v939_v55 }
 0x12c   :  { %v659_v34 = vpop.xlane.xlu1 %658 }
 0x12d   :  { %v739_v35 = vmul.f32 0.015625, %v659_v34  ;;  %v680_v33 = vpop.xlane.xlu2 %679 }
 0x12e   :  { %v677_v40 = vpop.xlane.xlu0 %676  ;;  %v746_v50 = vmul.f32 0.015625, %v680_v33 }
 0x12f   :  { %v931_v14 = vperm.slane %v739_v35, %v1782_v28  ;;  %v745_v41 = vmul.f32 0.015625, %v677_v40 }
 0x130   :  { %v944_v58 = vperm.slane %v746_v50, %v1758_v56 }
 0x131   :  { %v932_v47 = vsel %vm841_vm7, %v931_v14, %v930_v52  ;;  %v942_v44 = vperm.slane %v745_v41, %v1741_v23 }
 0x132   :  { %v959_v49 = vsel %vm958_vm9, %v932_v47, %v957_v25 }
 0x133   :  { %v943_v60 = vsel %vm833_vm5, %v942_v44, %v941_v53 }
 0x134   :  { %v945_v62 = vsel %vm837_vm6, %v944_v58, %v943_v60 }
 0x136   :  { %v683_v46 = vpop.xlane.xlu0 %682 }
 0x137   :  { %v747_v61 = vmul.f32 0.015625, %v683_v46 }
 0x139   :  { %v946_v23 = vperm.slane %v747_v61, %v1782_v28  ;;  %v1074_v28 = vld [vmem:[%s1893_s4] ss:$0 sm:$0xff] }
 0x13b   :  { %v947_v63 = vsel %vm841_vm7, %v946_v23, %v945_v62 }
 0x13c   :  { %v961_v27 = vsel %vm960_vm1, %v947_v63, %v959_v49 }
 0x13d   :  { %963 = vst.msk [vmem:[#allocation2] sm:$0xff] %vm491_vm0, %v961_v27 }
 0x144   :  { %v964_v56 = vld [vmem:[#allocation2] sm:$0xff] }
 0x145   :  { %1333 = vlog2.f32 %v964_v56 }
 0x14b   :  { %v1334_v1 = vpop.eup %1333 }
 0x14c   :  { %v966_v3 = vmul.f32 0.6931472, %v1334_v1 }
 0x14e   :  { %v968_v4 = vmul.f32 %v967_v2, %v966_v3 }
 0x150   :  { %v969_v5 = vmul.f32 1.442695, %v968_v4 }
 0x152   :  { %1335 = vpow2.f32 %v969_v5 }
 0x158   :  { %v1336_v8 = vpop.eup %1335 }
 0x159   :  { %v971_v9 = vpack.c.bf16 %v1336_v8, %v1336_v8 }
 0x15b   :  { %1067 = vmatmul.msk.bf16.vlgmr.msra.gmra.mxu0 %vm491_vm0, %v971_v9 }
 0x1d8   :  { %v1020_v10 = vpop.f32.mrf.mxu0 }
 0x1d9   :  { %v1021_v22 = vadd.f32 %v1074_v28, %v1020_v10 }
 0x1db   :  { %vm1025_vm2 = vcmp.ge.f32.partialorder %v1021_v22, 0.0  ;;  %v1027_v13 = vmul.f32 %v1026_v11, %v1021_v22 }
 0x1dd   :  { %v1028_v57 = vsel %vm1025_vm2, %v1021_v22, %v1027_v13 }
 0x1de   :  { %v1029_v15 = vmul.f32 %v1028_v57, %v1028_v57 }
 0x1e0   :  { %v1022_v16 = vpop.f32.mrf.mxu0  ;;  %v1031_v17 = vsel %vm1030_vm3, %v1029_v15, 0.0 }
 0x1e1   :  { %1032 = vadd.xlane.f32.xlu1 %v1031_v17 }
 0x254   :  { %v1033_v24 = vpop.xlane.xlu1 %1032 }
 0x255   :  { %v1034_v12 = vmax.f32 %v1033_v24, 1e-24 }
 0x257   :  { %1337 = vrsqrt.f32 %v1034_v12  ;;  %vm1041_vm4 = vweird.f32 %v1034_v12 }
 0x25d   :  { %v1338_v18 = vpop.eup %1337 }
 0x25e   :  { %v1036_v19 = vmul.f32 %v1338_v18, %v1034_v12  ;;  %vm1042_vm0 = vweird.f32 %v1338_v18 }
 0x25f   :  { %vm1043_vm5 = vmor %vm1041_vm4, %vm1042_vm0 }
 0x260   :  { %v1037_v20 = vmul.f32 %v1338_v18, %v1036_v19 }
 0x262   :  { %v1038_v25 = vmul.f32 0.5, %v1037_v20 }
 0x264   :  { %v1039_v26 = vsub.f32 1.5, %v1038_v25 }
 0x266   :  { %v1040_v29 = vmul.f32 %v1338_v18, %v1039_v26 }
 0x268   :  { %v1044_v30 = vsel %vm1043_vm5, %v1338_v18, %v1040_v29 }
 0x269   :  { %v1045_v31 = vmul.f32 %v1044_v30, %v1028_v57 }
 0x26b   :  { %1046 = vst.msk [vmem:[%s1896_s5] sm:$0xff] %vm1030_vm3, %v1045_v31 }

</bundles_post_ra>
